<compile_context>
chip_gen: v7x
topology: tpu7x:2x2x1
jax: 0.10.0
libtpu: 0.0.40
codegen_flags: <defaults>
</compile_context>

<pallas_src>
import functools

import jax
import jax.numpy as jnp
from jax import lax
from jax.experimental import pallas as pl
from jax.experimental.pallas import tpu as pltpu

STATE_DIM = 10
ACTION_DIM = 2
HIDDEN_DIM = 20
FEATURE_DIM = 5
INPUT_DIM = STATE_DIM + ACTION_DIM        # 12 : GRU input = cat(state, action)

LANE = 128                                # TPU lane width
IN_PAD = 16                               # GRU input padded to a sublane-aligned 16 cols
OFF_R, OFF_Z, OFF_N = 0, 32, 64           # lane offsets of the packed r / z / n gate blocks
Q_LANE = FEATURE_DIM                      # lane that carries the scalar q-value in the output


def _round_up(a, b):
    return ((a + b - 1) // b) * b


def critic_gru_kernel(seq_len, bb,
                      x_ref, w_ih_ref, w_hh_ref, b_ih_ref, b_hn_ref,
                      w1_ref, b1_ref, w2_ref, b2_ref, wfc_ref, bfc_ref,
                      out_ref, gi_ref, hs_ref):
    """One batch chunk: whole (time-major) chunk resident in VMEM."""
    f32 = jnp.float32
    H = HIDDEN_DIM

    # ---- stage 1: input projection for ALL timesteps in one matmul (recurrence-free).
    # All biases except the n-gate's b_hh are already folded into b_ih.
    x2d = x_ref[...].reshape(seq_len * bb, IN_PAD)
    gi_ref[...] = (jnp.dot(x2d, w_ih_ref[...], preferred_element_type=f32)
                   + b_ih_ref[...])

    # ---- stage 2: serial GRU recurrence (PyTorch gate order r, z, n), gates packed into
    # one 128-lane block.  The hidden state lives in lanes [OFF_N, OFF_N+H); all other
    # lanes hold bounded don't-care values whose W_hh / W1 rows are zero, so they never
    # feed a matmul.  seq_len is a small compile-time constant -> static unroll, static
    # sublane-aligned slices.  W_hh is read from VMEM inside each dot (no hoisted value
    # spanning the unrolled loop -> no spill pressure on the serial path).
    # TODO(synk): for long sequences, tile the time axis with a real grid and carry h in a
    # persistent VMEM scratch instead of keeping the whole chunk resident.
    b_hn = jnp.broadcast_to(b_hn_ref[...], (bb, LANE))      # hoisted: no per-step broadcast
    h = jnp.zeros((bb, LANE), f32)
    for t in range(seq_len):
        lo = t * bb
        gi_t = gi_ref[lo:lo + bb, :]                                     # (BB, 128)
        gh = jnp.dot(h, w_hh_ref[...], preferred_element_type=f32)       # (BB, 128), 1 MXU push
        rz = jax.nn.sigmoid(gi_t + gh)              # r valid @ lanes OFF_R.., z @ lanes OFF_Z..
        r_n = pltpu.roll(rz, shift=OFF_N - OFF_R, axis=1)   # align r with the n lanes (XLU)
        z_n = pltpu.roll(rz, shift=OFF_N - OFF_Z, axis=1)   # align z with the n lanes (XLU)
        n = jnp.tanh(gi_t + r_n * (gh + b_hn))               # valid @ n lanes
        h = (1.0 - z_n) * n + z_n * h                        # valid @ n lanes
        hs_ref[lo:lo + bb, :] = h

    # ---- stage 3: FeatureExtractor + value head, batched over all (t, b) rows at once.
    # wfc/bfc are laid out so q lands in lane Q_LANE; feat occupies lanes 0:FEATURE_DIM and
    # is exactly zero elsewhere, so feat + q is the packed lane-dense output.
    hs = hs_ref[...]                                                     # (S*BB, 128)
    f1 = jnp.maximum(jnp.dot(hs, w1_ref[...], preferred_element_type=f32)
                     + b1_ref[...], 0.0)
    feat = jnp.maximum(jnp.dot(f1, w2_ref[...], preferred_element_type=f32)
                       + b2_ref[...], 0.0)
    q = jnp.dot(feat, wfc_ref[...], preferred_element_type=f32) + bfc_ref[...]
    out_ref[...] = (feat + q).reshape(seq_len, bb, LANE)


def _prep_padded_params(p):
    """Pack gates into one 128-lane block (r@0, z@32, n@64); hidden lives at the n lanes."""
    H, F, D = HIDDEN_DIM, FEATURE_DIM, INPUT_DIM
    f32 = jnp.float32

    w_ih_t = p["w_ih"].T.astype(f32)      # (D, 3H), gate cols ordered r, z, n
    w_hh_t = p["w_hh"].T.astype(f32)      # (H, 3H)

    w_ih_p = jnp.zeros((IN_PAD, LANE), f32)
    w_hh_p = jnp.zeros((LANE, LANE), f32)
    b_ih_p = jnp.zeros((1, LANE), f32)
    b_hn_p = jnp.zeros((1, LANE), f32)
    for g, off in enumerate((OFF_R, OFF_Z, OFF_N)):
        w_ih_p = w_ih_p.at[:D, off:off + H].set(w_ih_t[:, g * H:(g + 1) * H])
        # hidden state is carried in lanes [OFF_N, OFF_N+H) -> W_hh rows live there
        w_hh_p = w_hh_p.at[OFF_N:OFF_N + H, off:off + H].set(w_hh_t[:, g * H:(g + 1) * H])
        b_ih_p = b_ih_p.at[0, off:off + H].set(p["b_ih"][g * H:(g + 1) * H])
    # fold b_hh of the r and z gates into the hoisted input-projection bias; only the
    # n-gate b_hh must stay separate (it sits inside r * (W_hn h + b_hn)).
    b_ih_p = b_ih_p.at[0, OFF_R:OFF_R + H].add(p["b_hh"][0:H])
    b_ih_p = b_ih_p.at[0, OFF_Z:OFF_Z + H].add(p["b_hh"][H:2 * H])
    b_hn_p = b_hn_p.at[0, OFF_N:OFF_N + H].set(p["b_hh"][2 * H:3 * H])

    w1_p = jnp.zeros((LANE, LANE), f32).at[OFF_N:OFF_N + H, :F].set(p["w1"].T)
    b1_p = jnp.zeros((1, LANE), f32).at[0, :F].set(p["b1"])
    w2_p = jnp.zeros((LANE, LANE), f32).at[:F, :F].set(p["w2"].T)
    b2_p = jnp.zeros((1, LANE), f32).at[0, :F].set(p["b2"])
    # value head writes its single output into lane Q_LANE so feat + q pack into one array
    wfc_p = jnp.zeros((LANE, LANE), f32).at[:F, Q_LANE:Q_LANE + 1].set(p["wfc"].T)
    bfc_p = jnp.zeros((1, LANE), f32).at[0, Q_LANE].set(p["bfc"][0])
    return (w_ih_p, w_hh_p, b_ih_p, b_hn_p, w1_p, b1_p, w2_p, b2_p, wfc_p, bfc_p)


def critic_gru_forward(state, action, p):
    """state: (B, S, state_dim), action: (B, S, action_dim), batch-first (PyTorch convention).
    Returns (q_value (B, S, 1), features (B, S, feature_dim))."""
    B, S, _ = state.shape
    Bp = _round_up(B, 8)                  # pad batch up to a full sublane group
    BB = min(Bp, 128)                     # batch-chunk per grid step (independent -> parallel)
    Bp = _round_up(Bp, BB)
    num_chunks = Bp // BB

    x = jnp.concatenate([state, action], axis=-1).astype(jnp.float32)    # (B, S, 12)
    x_tm = jnp.transpose(x, (1, 0, 2))                                    # time-major (S, B, 12)
    x_p = jnp.zeros((S, Bp, IN_PAD), jnp.float32).at[:, :B, :INPUT_DIM].set(x_tm)

    weights = _prep_padded_params(p)
    args = (x_p,) + weights

    # explicit VMEM budget (double-buffered blocks + scratch), capped below physical VMEM
    bytes_f32 = 4
    x_block_bytes = S * BB * IN_PAD * bytes_f32
    out_block_bytes = S * BB * LANE * bytes_f32
    scratch_bytes = 2 * S * BB * LANE * bytes_f32
    weight_bytes = sum(int(w.size) for w in weights) * bytes_f32
    vmem_need = 2 * (x_block_bytes + out_block_bytes + weight_bytes) + scratch_bytes
    vmem_limit = int(min(48 * 1024 * 1024, max(2 * vmem_need, 8 * 1024 * 1024)))

    rows = S * Bp
    flops = 2 * rows * (IN_PAD * LANE + 4 * LANE * LANE)
    transcendentals = 2 * rows * LANE
    bytes_accessed = (int(x_p.size) + sum(int(w.size) for w in weights) + rows * LANE) * bytes_f32

    in_specs = ([pl.BlockSpec((S, BB, IN_PAD), lambda i: (0, i, 0))]
                + [pl.BlockSpec(w.shape, lambda i: (0, 0)) for w in weights])

    out = pl.pallas_call(
        functools.partial(critic_gru_kernel, S, BB),
        grid=(num_chunks,),                           # independent batch chunks
        in_specs=in_specs,
        out_specs=pl.BlockSpec((S, BB, LANE), lambda i: (0, i, 0)),
        out_shape=jax.ShapeDtypeStruct((S, Bp, LANE), jnp.float32),
        scratch_shapes=[
            pltpu.VMEM((S * BB, LANE), jnp.float32),  # hoisted input projection gi
            pltpu.VMEM((S * BB, LANE), jnp.float32),  # stacked hidden states
        ],
        compiler_params=pltpu.CompilerParams(
            dimension_semantics=("parallel",),        # both TCs get work on v7x when chunks > 1
            vmem_limit_bytes=vmem_limit),
        cost_estimate=pl.CostEstimate(flops=flops, transcendentals=transcendentals,
                                      bytes_accessed=bytes_accessed),
    )(*args)

    out_bt = jnp.transpose(out, (1, 0, 2))            # (Bp, S, 128)
    feat = out_bt[:B, :, :FEATURE_DIM]
    q = out_bt[:B, :, Q_LANE:Q_LANE + 1]
    return q, feat


def init_params(key):
    """Deterministic PyTorch-style uniform init with the shapes from CriticGRU.__init__."""
    ks = jax.random.split(key, 10)
    kh = 1.0 / jnp.sqrt(HIDDEN_DIM)
    kf = 1.0 / jnp.sqrt(FEATURE_DIM)

    def u(k, shape, bound):
        return jax.random.uniform(k, shape, jnp.float32, -bound, bound)

    return {
        # nn.GRU(state_dim + action_dim, hidden_dim, batch_first=True)
        "w_ih": u(ks[0], (3 * HIDDEN_DIM, INPUT_DIM), kh),
        "w_hh": u(ks[1], (3 * HIDDEN_DIM, HIDDEN_DIM), kh),
        "b_ih": u(ks[2], (3 * HIDDEN_DIM,), kh),
        "b_hh": u(ks[3], (3 * HIDDEN_DIM,), kh),
        # FeatureExtractor: Linear(hidden_dim, feature_dim), Linear(feature_dim, feature_dim)
        "w1": u(ks[4], (FEATURE_DIM, HIDDEN_DIM), kh),
        "b1": u(ks[5], (FEATURE_DIM,), kh),
        "w2": u(ks[6], (FEATURE_DIM, FEATURE_DIM), kf),
        "b2": u(ks[7], (FEATURE_DIM,), kf),
        # self.fc = nn.Linear(5, 1): unbounded Q-value head (no tanh)
        "wfc": u(ks[8], (1, FEATURE_DIM), kf),
        "bfc": u(ks[9], (1,), kf),
    }


def reference_forward(state, action, p):
    """Pure-JAX reference matching torch.nn.GRU(batch_first=True) + FeatureExtractor + fc."""
    x = jnp.concatenate([state, action], axis=-1).astype(jnp.float32)
    B, S, _ = x.shape
    H = HIDDEN_DIM

    def cell(h, x_t):
        gi = x_t @ p["w_ih"].T + p["b_ih"]
        gh = h @ p["w_hh"].T + p["b_hh"]
        r = jax.nn.sigmoid(gi[:, :H] + gh[:, :H])
        z = jax.nn.sigmoid(gi[:, H:2 * H] + gh[:, H:2 * H])
        n = jnp.tanh(gi[:, 2 * H:] + r * gh[:, 2 * H:])
        h = (1.0 - z) * n + z * h
        return h, h

    h0 = jnp.zeros((B, H), jnp.float32)
    _, hs = lax.scan(cell, h0, jnp.transpose(x, (1, 0, 2)))
    hs = jnp.transpose(hs, (1, 0, 2))                               # (B, S, H)
    f1 = jax.nn.relu(hs @ p["w1"].T + p["b1"])
    feat = jax.nn.relu(f1 @ p["w2"].T + p["b2"])
    q = feat @ p["wfc"].T + p["bfc"]
    return q, feat


if __name__ == "__main__":
    key = jax.random.PRNGKey(0)
    k_s, k_a, k_p = jax.random.split(key, 3)

    B, S = 2, 8                                    # small shapes: batch=2, seq=8
    state = jax.random.normal(k_s, (B, S, STATE_DIM), jnp.float32)
    action = jax.random.normal(k_a, (B, S, ACTION_DIM), jnp.float32)
    params = init_params(k_p)

    q, feats = jax.jit(critic_gru_forward)(state, action, params)
    q = jax.block_until_ready(q)
    feats = jax.block_until_ready(feats)

    q_ref, feats_ref = reference_forward(state, action, params)
    assert q.shape == (B, S, 1)
    assert feats.shape == (B, S, FEATURE_DIM)
    assert jnp.allclose(q, q_ref, atol=1e-3, rtol=1e-3)
    assert jnp.allclose(feats, feats_ref, atol=1e-3, rtol=1e-3)

    print("KERNEL_OK")
</pallas_src>

<mosaic_0001>
module attributes {stable_mosaic.version = 11 : i64} {
  func.func @critic_gru_kernel(%arg0: i32, %arg1: memref<8x8x16xf32, #tpu.memory_space<vmem>>, %arg2: memref<16x128xf32, #tpu.memory_space<vmem>>, %arg3: memref<128x128xf32, #tpu.memory_space<vmem>>, %arg4: memref<1x128xf32, #tpu.memory_space<vmem>>, %arg5: memref<1x128xf32, #tpu.memory_space<vmem>>, %arg6: memref<128x128xf32, #tpu.memory_space<vmem>>, %arg7: memref<1x128xf32, #tpu.memory_space<vmem>>, %arg8: memref<128x128xf32, #tpu.memory_space<vmem>>, %arg9: memref<1x128xf32, #tpu.memory_space<vmem>>, %arg10: memref<128x128xf32, #tpu.memory_space<vmem>>, %arg11: memref<1x128xf32, #tpu.memory_space<vmem>>, %arg12: memref<8x8x128xf32, #tpu.memory_space<vmem>>, %arg13: memref<64x128xf32, #tpu.memory_space<vmem>>, %arg14: memref<64x128xf32, #tpu.memory_space<vmem>>) attributes {dimension_semantics = [#tpu.dimension_semantics<parallel>], iteration_bounds = array<i64: 1>, scalar_prefetch = 0 : i64, scratch_operands = 2 : i64, tpu.core_type = #tpu.core_type<tc>, window_params = [{transform_indices = @transform_0, window_bounds = array<i64: 8, 8, 16>}, {pipeline_mode = #tpu.pipeline_mode<synchronous>, transform_indices = @transform_1, window_bounds = array<i64: 16, 128>}, {pipeline_mode = #tpu.pipeline_mode<synchronous>, transform_indices = @transform_2, window_bounds = array<i64: 128, 128>}, {pipeline_mode = #tpu.pipeline_mode<synchronous>, transform_indices = @transform_3, window_bounds = array<i64: 1, 128>}, {pipeline_mode = #tpu.pipeline_mode<synchronous>, transform_indices = @transform_4, window_bounds = array<i64: 1, 128>}, {pipeline_mode = #tpu.pipeline_mode<synchronous>, transform_indices = @transform_5, window_bounds = array<i64: 128, 128>}, {pipeline_mode = #tpu.pipeline_mode<synchronous>, transform_indices = @transform_6, window_bounds = array<i64: 1, 128>}, {pipeline_mode = #tpu.pipeline_mode<synchronous>, transform_indices = @transform_7, window_bounds = array<i64: 128, 128>}, {pipeline_mode = #tpu.pipeline_mode<synchronous>, transform_indices = @transform_8, window_bounds = array<i64: 1, 128>}, {pipeline_mode = #tpu.pipeline_mode<synchronous>, transform_indices = @transform_9, window_bounds = array<i64: 128, 128>}, {pipeline_mode = #tpu.pipeline_mode<synchronous>, transform_indices = @transform_10, window_bounds = array<i64: 1, 128>}, {transform_indices = @transform_11, window_bounds = array<i64: 8, 8, 128>}]} {
    %c0 = arith.constant 0 : index
    %c0_0 = arith.constant 0 : index
    %c0_1 = arith.constant 0 : index
    %0 = vector.load %arg1[%c0, %c0_0, %c0_1] : memref<8x8x16xf32, #tpu.memory_space<vmem>>, vector<8x8x16xf32>
    %1 = vector.shape_cast %0 : vector<8x8x16xf32> to vector<64x16xf32>
    %c0_2 = arith.constant 0 : index
    %c0_3 = arith.constant 0 : index
    %2 = vector.load %arg2[%c0_2, %c0_3] : memref<16x128xf32, #tpu.memory_space<vmem>>, vector<16x128xf32>
    %cst = arith.constant dense<0.000000e+00> : vector<64x128xf32>
    %3 = tpu.matmul %1, %2, %cst {dimension_numbers = #tpu.dot_dimension_numbers<[1], [0], [0], [1], [0, 0, 1, 1], [], []>} : vector<64x16xf32>, vector<16x128xf32>, vector<64x128xf32> -> vector<64x128xf32>
    %c0_4 = arith.constant 0 : index
    %c0_5 = arith.constant 0 : index
    %4 = vector.load %arg4[%c0_4, %c0_5] : memref<1x128xf32, #tpu.memory_space<vmem>>, vector<1x128xf32>
    %5 = vector.broadcast %4 : vector<1x128xf32> to vector<64x128xf32>
    %6 = arith.addf %3, %5 : vector<64x128xf32>
    %c0_6 = arith.constant 0 : index
    %c0_7 = arith.constant 0 : index
    %7 = vector.load %arg13[%c0_6, %c0_7] : memref<64x128xf32, #tpu.memory_space<vmem>>, vector<64x128xf32>
    tpu.vector_store %arg13[%c0_6, %c0_7], %6 {strides = array<i32>} : memref<64x128xf32, #tpu.memory_space<vmem>>, vector<64x128xf32>,
    %c0_8 = arith.constant 0 : index
    %c0_9 = arith.constant 0 : index
    %8 = vector.load %arg5[%c0_8, %c0_9] : memref<1x128xf32, #tpu.memory_space<vmem>>, vector<1x128xf32>
    %9 = vector.shape_cast %8 : vector<1x128xf32> to vector<1x128xf32>
    %10 = vector.broadcast %9 : vector<1x128xf32> to vector<8x128xf32>
    %cst_10 = arith.constant 0.000000e+00 : f32
    %11 = vector.broadcast %cst_10 : f32 to vector<8x128xf32>
    %c0_11 = arith.constant 0 : index
    %c0_12 = arith.constant 0 : index
    %12 = vector.load %arg13[%c0_11, %c0_12] : memref<64x128xf32, #tpu.memory_space<vmem>>, vector<8x128xf32>
    %c0_13 = arith.constant 0 : index
    %c0_14 = arith.constant 0 : index
    %13 = vector.load %arg3[%c0_13, %c0_14] : memref<128x128xf32, #tpu.memory_space<vmem>>, vector<128x128xf32>
    %cst_15 = arith.constant dense<0.000000e+00> : vector<8x128xf32>
    %14 = tpu.matmul %11, %13, %cst_15 {dimension_numbers = #tpu.dot_dimension_numbers<[1], [0], [0], [1], [0, 0, 1, 1], [], []>} : vector<8x128xf32>, vector<128x128xf32>, vector<8x128xf32> -> vector<8x128xf32>
    %15 = arith.addf %12, %14 : vector<8x128xf32>
    %16 = arith.negf %15 : vector<8x128xf32>
    %17 = math.exp %16 : vector<8x128xf32>
    %cst_16 = arith.constant 1.000000e+00 : f32
    %18 = vector.broadcast %cst_16 : f32 to vector<8x128xf32>
    %19 = arith.addf %18, %17 : vector<8x128xf32>
    %20 = arith.divf %18, %19 : vector<8x128xf32>
    %c64_i32 = arith.constant 64 : i32
    %21 = tpu.dynamic_rotate %20 by %c64_i32 dim 1 : vector<8x128xf32>, i32 -> vector<8x128xf32>
    %c32_i32 = arith.constant 32 : i32
    %22 = tpu.dynamic_rotate %20 by %c32_i32 dim 1 : vector<8x128xf32>, i32 -> vector<8x128xf32>
    %23 = arith.addf %14, %10 : vector<8x128xf32>
    %24 = arith.mulf %21, %23 : vector<8x128xf32>
    %25 = arith.addf %12, %24 : vector<8x128xf32>
    %26 = math.tanh %25 : vector<8x128xf32>
    %cst_17 = arith.constant 1.000000e+00 : f32
    %27 = vector.broadcast %cst_17 : f32 to vector<8x128xf32>
    %28 = arith.subf %27, %22 : vector<8x128xf32>
    %29 = arith.mulf %28, %26 : vector<8x128xf32>
    %30 = arith.mulf %22, %11 : vector<8x128xf32>
    %31 = arith.addf %29, %30 : vector<8x128xf32>
    %c0_18 = arith.constant 0 : index
    %c0_19 = arith.constant 0 : index
    %32 = vector.load %arg14[%c0_18, %c0_19] : memref<64x128xf32, #tpu.memory_space<vmem>>, vector<8x128xf32>
    tpu.vector_store %arg14[%c0_18, %c0_19], %31 {strides = array<i32>} : memref<64x128xf32, #tpu.memory_space<vmem>>, vector<8x128xf32>,
    %c8 = arith.constant 8 : index
    %c0_20 = arith.constant 0 : index
    %33 = vector.load %arg13[%c8, %c0_20] : memref<64x128xf32, #tpu.memory_space<vmem>>, vector<8x128xf32>
    %c0_21 = arith.constant 0 : index
    %c0_22 = arith.constant 0 : index
    %34 = vector.load %arg3[%c0_21, %c0_22] : memref<128x128xf32, #tpu.memory_space<vmem>>, vector<128x128xf32>
    %cst_23 = arith.constant dense<0.000000e+00> : vector<8x128xf32>
    %35 = tpu.matmul %31, %34, %cst_23 {dimension_numbers = #tpu.dot_dimension_numbers<[1], [0], [0], [1], [0, 0, 1, 1], [], []>} : vector<8x128xf32>, vector<128x128xf32>, vector<8x128xf32> -> vector<8x128xf32>
    %36 = arith.addf %33, %35 : vector<8x128xf32>
    %37 = arith.negf %36 : vector<8x128xf32>
    %38 = math.exp %37 : vector<8x128xf32>
    %cst_24 = arith.constant 1.000000e+00 : f32
    %39 = vector.broadcast %cst_24 : f32 to vector<8x128xf32>
    %40 = arith.addf %39, %38 : vector<8x128xf32>
    %41 = arith.divf %39, %40 : vector<8x128xf32>
    %c64_i32_25 = arith.constant 64 : i32
    %42 = tpu.dynamic_rotate %41 by %c64_i32_25 dim 1 : vector<8x128xf32>, i32 -> vector<8x128xf32>
    %c32_i32_26 = arith.constant 32 : i32
    %43 = tpu.dynamic_rotate %41 by %c32_i32_26 dim 1 : vector<8x128xf32>, i32 -> vector<8x128xf32>
    %44 = arith.addf %35, %10 : vector<8x128xf32>
    %45 = arith.mulf %42, %44 : vector<8x128xf32>
    %46 = arith.addf %33, %45 : vector<8x128xf32>
    %47 = math.tanh %46 : vector<8x128xf32>
    %cst_27 = arith.constant 1.000000e+00 : f32
    %48 = vector.broadcast %cst_27 : f32 to vector<8x128xf32>
    %49 = arith.subf %48, %43 : vector<8x128xf32>
    %50 = arith.mulf %49, %47 : vector<8x128xf32>
    %51 = arith.mulf %43, %31 : vector<8x128xf32>
    %52 = arith.addf %50, %51 : vector<8x128xf32>
    %c8_28 = arith.constant 8 : index
    %c0_29 = arith.constant 0 : index
    %53 = vector.load %arg14[%c8_28, %c0_29] : memref<64x128xf32, #tpu.memory_space<vmem>>, vector<8x128xf32>
    tpu.vector_store %arg14[%c8_28, %c0_29], %52 {strides = array<i32>} : memref<64x128xf32, #tpu.memory_space<vmem>>, vector<8x128xf32>,
    %c16 = arith.constant 16 : index
    %c0_30 = arith.constant 0 : index
    %54 = vector.load %arg13[%c16, %c0_30] : memref<64x128xf32, #tpu.memory_space<vmem>>, vector<8x128xf32>
    %c0_31 = arith.constant 0 : index
    %c0_32 = arith.constant 0 : index
    %55 = vector.load %arg3[%c0_31, %c0_32] : memref<128x128xf32, #tpu.memory_space<vmem>>, vector<128x128xf32>
    %cst_33 = arith.constant dense<0.000000e+00> : vector<8x128xf32>
    %56 = tpu.matmul %52, %55, %cst_33 {dimension_numbers = #tpu.dot_dimension_numbers<[1], [0], [0], [1], [0, 0, 1, 1], [], []>} : vector<8x128xf32>, vector<128x128xf32>, vector<8x128xf32> -> vector<8x128xf32>
    %57 = arith.addf %54, %56 : vector<8x128xf32>
    %58 = arith.negf %57 : vector<8x128xf32>
    %59 = math.exp %58 : vector<8x128xf32>
    %cst_34 = arith.constant 1.000000e+00 : f32
    %60 = vector.broadcast %cst_34 : f32 to vector<8x128xf32>
    %61 = arith.addf %60, %59 : vector<8x128xf32>
    %62 = arith.divf %60, %61 : vector<8x128xf32>
    %c64_i32_35 = arith.constant 64 : i32
    %63 = tpu.dynamic_rotate %62 by %c64_i32_35 dim 1 : vector<8x128xf32>, i32 -> vector<8x128xf32>
    %c32_i32_36 = arith.constant 32 : i32
    %64 = tpu.dynamic_rotate %62 by %c32_i32_36 dim 1 : vector<8x128xf32>, i32 -> vector<8x128xf32>
    %65 = arith.addf %56, %10 : vector<8x128xf32>
    %66 = arith.mulf %63, %65 : vector<8x128xf32>
    %67 = arith.addf %54, %66 : vector<8x128xf32>
    %68 = math.tanh %67 : vector<8x128xf32>
    %cst_37 = arith.constant 1.000000e+00 : f32
    %69 = vector.broadcast %cst_37 : f32 to vector<8x128xf32>
    %70 = arith.subf %69, %64 : vector<8x128xf32>
    %71 = arith.mulf %70, %68 : vector<8x128xf32>
    %72 = arith.mulf %64, %52 : vector<8x128xf32>
    %73 = arith.addf %71, %72 : vector<8x128xf32>
    %c16_38 = arith.constant 16 : index
    %c0_39 = arith.constant 0 : index
    %74 = vector.load %arg14[%c16_38, %c0_39] : memref<64x128xf32, #tpu.memory_space<vmem>>, vector<8x128xf32>
    tpu.vector_store %arg14[%c16_38, %c0_39], %73 {strides = array<i32>} : memref<64x128xf32, #tpu.memory_space<vmem>>, vector<8x128xf32>,
    %c24 = arith.constant 24 : index
    %c0_40 = arith.constant 0 : index
    %75 = vector.load %arg13[%c24, %c0_40] : memref<64x128xf32, #tpu.memory_space<vmem>>, vector<8x128xf32>
    %c0_41 = arith.constant 0 : index
    %c0_42 = arith.constant 0 : index
    %76 = vector.load %arg3[%c0_41, %c0_42] : memref<128x128xf32, #tpu.memory_space<vmem>>, vector<128x128xf32>
    %cst_43 = arith.constant dense<0.000000e+00> : vector<8x128xf32>
    %77 = tpu.matmul %73, %76, %cst_43 {dimension_numbers = #tpu.dot_dimension_numbers<[1], [0], [0], [1], [0, 0, 1, 1], [], []>} : vector<8x128xf32>, vector<128x128xf32>, vector<8x128xf32> -> vector<8x128xf32>
    %78 = arith.addf %75, %77 : vector<8x128xf32>
    %79 = arith.negf %78 : vector<8x128xf32>
    %80 = math.exp %79 : vector<8x128xf32>
    %cst_44 = arith.constant 1.000000e+00 : f32
    %81 = vector.broadcast %cst_44 : f32 to vector<8x128xf32>
    %82 = arith.addf %81, %80 : vector<8x128xf32>
    %83 = arith.divf %81, %82 : vector<8x128xf32>
    %c64_i32_45 = arith.constant 64 : i32
    %84 = tpu.dynamic_rotate %83 by %c64_i32_45 dim 1 : vector<8x128xf32>, i32 -> vector<8x128xf32>
    %c32_i32_46 = arith.constant 32 : i32
    %85 = tpu.dynamic_rotate %83 by %c32_i32_46 dim 1 : vector<8x128xf32>, i32 -> vector<8x128xf32>
    %86 = arith.addf %77, %10 : vector<8x128xf32>
    %87 = arith.mulf %84, %86 : vector<8x128xf32>
    %88 = arith.addf %75, %87 : vector<8x128xf32>
    %89 = math.tanh %88 : vector<8x128xf32>
    %cst_47 = arith.constant 1.000000e+00 : f32
    %90 = vector.broadcast %cst_47 : f32 to vector<8x128xf32>
    %91 = arith.subf %90, %85 : vector<8x128xf32>
    %92 = arith.mulf %91, %89 : vector<8x128xf32>
    %93 = arith.mulf %85, %73 : vector<8x128xf32>
    %94 = arith.addf %92, %93 : vector<8x128xf32>
    %c24_48 = arith.constant 24 : index
    %c0_49 = arith.constant 0 : index
    %95 = vector.load %arg14[%c24_48, %c0_49] : memref<64x128xf32, #tpu.memory_space<vmem>>, vector<8x128xf32>
    tpu.vector_store %arg14[%c24_48, %c0_49], %94 {strides = array<i32>} : memref<64x128xf32, #tpu.memory_space<vmem>>, vector<8x128xf32>,
    %c32 = arith.constant 32 : index
    %c0_50 = arith.constant 0 : index
    %96 = vector.load %arg13[%c32, %c0_50] : memref<64x128xf32, #tpu.memory_space<vmem>>, vector<8x128xf32>
    %c0_51 = arith.constant 0 : index
    %c0_52 = arith.constant 0 : index
    %97 = vector.load %arg3[%c0_51, %c0_52] : memref<128x128xf32, #tpu.memory_space<vmem>>, vector<128x128xf32>
    %cst_53 = arith.constant dense<0.000000e+00> : vector<8x128xf32>
    %98 = tpu.matmul %94, %97, %cst_53 {dimension_numbers = #tpu.dot_dimension_numbers<[1], [0], [0], [1], [0, 0, 1, 1], [], []>} : vector<8x128xf32>, vector<128x128xf32>, vector<8x128xf32> -> vector<8x128xf32>
    %99 = arith.addf %96, %98 : vector<8x128xf32>
    %100 = arith.negf %99 : vector<8x128xf32>
    %101 = math.exp %100 : vector<8x128xf32>
    %cst_54 = arith.constant 1.000000e+00 : f32
    %102 = vector.broadcast %cst_54 : f32 to vector<8x128xf32>
    %103 = arith.addf %102, %101 : vector<8x128xf32>
    %104 = arith.divf %102, %103 : vector<8x128xf32>
    %c64_i32_55 = arith.constant 64 : i32
    %105 = tpu.dynamic_rotate %104 by %c64_i32_55 dim 1 : vector<8x128xf32>, i32 -> vector<8x128xf32>
    %c32_i32_56 = arith.constant 32 : i32
    %106 = tpu.dynamic_rotate %104 by %c32_i32_56 dim 1 : vector<8x128xf32>, i32 -> vector<8x128xf32>
    %107 = arith.addf %98, %10 : vector<8x128xf32>
    %108 = arith.mulf %105, %107 : vector<8x128xf32>
    %109 = arith.addf %96, %108 : vector<8x128xf32>
    %110 = math.tanh %109 : vector<8x128xf32>
    %cst_57 = arith.constant 1.000000e+00 : f32
    %111 = vector.broadcast %cst_57 : f32 to vector<8x128xf32>
    %112 = arith.subf %111, %106 : vector<8x128xf32>
    %113 = arith.mulf %112, %110 : vector<8x128xf32>
    %114 = arith.mulf %106, %94 : vector<8x128xf32>
    %115 = arith.addf %113, %114 : vector<8x128xf32>
    %c32_58 = arith.constant 32 : index
    %c0_59 = arith.constant 0 : index
    %116 = vector.load %arg14[%c32_58, %c0_59] : memref<64x128xf32, #tpu.memory_space<vmem>>, vector<8x128xf32>
    tpu.vector_store %arg14[%c32_58, %c0_59], %115 {strides = array<i32>} : memref<64x128xf32, #tpu.memory_space<vmem>>, vector<8x128xf32>,
    %c40 = arith.constant 40 : index
    %c0_60 = arith.constant 0 : index
    %117 = vector.load %arg13[%c40, %c0_60] : memref<64x128xf32, #tpu.memory_space<vmem>>, vector<8x128xf32>
    %c0_61 = arith.constant 0 : index
    %c0_62 = arith.constant 0 : index
    %118 = vector.load %arg3[%c0_61, %c0_62] : memref<128x128xf32, #tpu.memory_space<vmem>>, vector<128x128xf32>
    %cst_63 = arith.constant dense<0.000000e+00> : vector<8x128xf32>
    %119 = tpu.matmul %115, %118, %cst_63 {dimension_numbers = #tpu.dot_dimension_numbers<[1], [0], [0], [1], [0, 0, 1, 1], [], []>} : vector<8x128xf32>, vector<128x128xf32>, vector<8x128xf32> -> vector<8x128xf32>
    %120 = arith.addf %117, %119 : vector<8x128xf32>
    %121 = arith.negf %120 : vector<8x128xf32>
    %122 = math.exp %121 : vector<8x128xf32>
    %cst_64 = arith.constant 1.000000e+00 : f32
    %123 = vector.broadcast %cst_64 : f32 to vector<8x128xf32>
    %124 = arith.addf %123, %122 : vector<8x128xf32>
    %125 = arith.divf %123, %124 : vector<8x128xf32>
    %c64_i32_65 = arith.constant 64 : i32
    %126 = tpu.dynamic_rotate %125 by %c64_i32_65 dim 1 : vector<8x128xf32>, i32 -> vector<8x128xf32>
    %c32_i32_66 = arith.constant 32 : i32
    %127 = tpu.dynamic_rotate %125 by %c32_i32_66 dim 1 : vector<8x128xf32>, i32 -> vector<8x128xf32>
    %128 = arith.addf %119, %10 : vector<8x128xf32>
    %129 = arith.mulf %126, %128 : vector<8x128xf32>
    %130 = arith.addf %117, %129 : vector<8x128xf32>
    %131 = math.tanh %130 : vector<8x128xf32>
    %cst_67 = arith.constant 1.000000e+00 : f32
    %132 = vector.broadcast %cst_67 : f32 to vector<8x128xf32>
    %133 = arith.subf %132, %127 : vector<8x128xf32>
    %134 = arith.mulf %133, %131 : vector<8x128xf32>
    %135 = arith.mulf %127, %115 : vector<8x128xf32>
    %136 = arith.addf %134, %135 : vector<8x128xf32>
    %c40_68 = arith.constant 40 : index
    %c0_69 = arith.constant 0 : index
    %137 = vector.load %arg14[%c40_68, %c0_69] : memref<64x128xf32, #tpu.memory_space<vmem>>, vector<8x128xf32>
    tpu.vector_store %arg14[%c40_68, %c0_69], %136 {strides = array<i32>} : memref<64x128xf32, #tpu.memory_space<vmem>>, vector<8x128xf32>,
    %c48 = arith.constant 48 : index
    %c0_70 = arith.constant 0 : index
    %138 = vector.load %arg13[%c48, %c0_70] : memref<64x128xf32, #tpu.memory_space<vmem>>, vector<8x128xf32>
    %c0_71 = arith.constant 0 : index
    %c0_72 = arith.constant 0 : index
    %139 = vector.load %arg3[%c0_71, %c0_72] : memref<128x128xf32, #tpu.memory_space<vmem>>, vector<128x128xf32>
    %cst_73 = arith.constant dense<0.000000e+00> : vector<8x128xf32>
    %140 = tpu.matmul %136, %139, %cst_73 {dimension_numbers = #tpu.dot_dimension_numbers<[1], [0], [0], [1], [0, 0, 1, 1], [], []>} : vector<8x128xf32>, vector<128x128xf32>, vector<8x128xf32> -> vector<8x128xf32>
    %141 = arith.addf %138, %140 : vector<8x128xf32>
    %142 = arith.negf %141 : vector<8x128xf32>
    %143 = math.exp %142 : vector<8x128xf32>
    %cst_74 = arith.constant 1.000000e+00 : f32
    %144 = vector.broadcast %cst_74 : f32 to vector<8x128xf32>
    %145 = arith.addf %144, %143 : vector<8x128xf32>
    %146 = arith.divf %144, %145 : vector<8x128xf32>
    %c64_i32_75 = arith.constant 64 : i32
    %147 = tpu.dynamic_rotate %146 by %c64_i32_75 dim 1 : vector<8x128xf32>, i32 -> vector<8x128xf32>
    %c32_i32_76 = arith.constant 32 : i32
    %148 = tpu.dynamic_rotate %146 by %c32_i32_76 dim 1 : vector<8x128xf32>, i32 -> vector<8x128xf32>
    %149 = arith.addf %140, %10 : vector<8x128xf32>
    %150 = arith.mulf %147, %149 : vector<8x128xf32>
    %151 = arith.addf %138, %150 : vector<8x128xf32>
    %152 = math.tanh %151 : vector<8x128xf32>
    %cst_77 = arith.constant 1.000000e+00 : f32
    %153 = vector.broadcast %cst_77 : f32 to vector<8x128xf32>
    %154 = arith.subf %153, %148 : vector<8x128xf32>
    %155 = arith.mulf %154, %152 : vector<8x128xf32>
    %156 = arith.mulf %148, %136 : vector<8x128xf32>
    %157 = arith.addf %155, %156 : vector<8x128xf32>
    %c48_78 = arith.constant 48 : index
    %c0_79 = arith.constant 0 : index
    %158 = vector.load %arg14[%c48_78, %c0_79] : memref<64x128xf32, #tpu.memory_space<vmem>>, vector<8x128xf32>
    tpu.vector_store %arg14[%c48_78, %c0_79], %157 {strides = array<i32>} : memref<64x128xf32, #tpu.memory_space<vmem>>, vector<8x128xf32>,
    %c56 = arith.constant 56 : index
    %c0_80 = arith.constant 0 : index
    %159 = vector.load %arg13[%c56, %c0_80] : memref<64x128xf32, #tpu.memory_space<vmem>>, vector<8x128xf32>
    %c0_81 = arith.constant 0 : index
    %c0_82 = arith.constant 0 : index
    %160 = vector.load %arg3[%c0_81, %c0_82] : memref<128x128xf32, #tpu.memory_space<vmem>>, vector<128x128xf32>
    %cst_83 = arith.constant dense<0.000000e+00> : vector<8x128xf32>
    %161 = tpu.matmul %157, %160, %cst_83 {dimension_numbers = #tpu.dot_dimension_numbers<[1], [0], [0], [1], [0, 0, 1, 1], [], []>} : vector<8x128xf32>, vector<128x128xf32>, vector<8x128xf32> -> vector<8x128xf32>
    %162 = arith.addf %159, %161 : vector<8x128xf32>
    %163 = arith.negf %162 : vector<8x128xf32>
    %164 = math.exp %163 : vector<8x128xf32>
    %cst_84 = arith.constant 1.000000e+00 : f32
    %165 = vector.broadcast %cst_84 : f32 to vector<8x128xf32>
    %166 = arith.addf %165, %164 : vector<8x128xf32>
    %167 = arith.divf %165, %166 : vector<8x128xf32>
    %c64_i32_85 = arith.constant 64 : i32
    %168 = tpu.dynamic_rotate %167 by %c64_i32_85 dim 1 : vector<8x128xf32>, i32 -> vector<8x128xf32>
    %c32_i32_86 = arith.constant 32 : i32
    %169 = tpu.dynamic_rotate %167 by %c32_i32_86 dim 1 : vector<8x128xf32>, i32 -> vector<8x128xf32>
    %170 = arith.addf %161, %10 : vector<8x128xf32>
    %171 = arith.mulf %168, %170 : vector<8x128xf32>
    %172 = arith.addf %159, %171 : vector<8x128xf32>
    %173 = math.tanh %172 : vector<8x128xf32>
    %cst_87 = arith.constant 1.000000e+00 : f32
    %174 = vector.broadcast %cst_87 : f32 to vector<8x128xf32>
    %175 = arith.subf %174, %169 : vector<8x128xf32>
    %176 = arith.mulf %175, %173 : vector<8x128xf32>
    %177 = arith.mulf %169, %157 : vector<8x128xf32>
    %178 = arith.addf %176, %177 : vector<8x128xf32>
    %c56_88 = arith.constant 56 : index
    %c0_89 = arith.constant 0 : index
    %179 = vector.load %arg14[%c56_88, %c0_89] : memref<64x128xf32, #tpu.memory_space<vmem>>, vector<8x128xf32>
    tpu.vector_store %arg14[%c56_88, %c0_89], %178 {strides = array<i32>} : memref<64x128xf32, #tpu.memory_space<vmem>>, vector<8x128xf32>,
    %c0_90 = arith.constant 0 : index
    %c0_91 = arith.constant 0 : index
    %180 = vector.load %arg14[%c0_90, %c0_91] : memref<64x128xf32, #tpu.memory_space<vmem>>, vector<64x128xf32>
    %c0_92 = arith.constant 0 : index
    %c0_93 = arith.constant 0 : index
    %181 = vector.load %arg6[%c0_92, %c0_93] : memref<128x128xf32, #tpu.memory_space<vmem>>, vector<128x128xf32>
    %cst_94 = arith.constant dense<0.000000e+00> : vector<64x128xf32>
    %182 = tpu.matmul %180, %181, %cst_94 {dimension_numbers = #tpu.dot_dimension_numbers<[1], [0], [0], [1], [0, 0, 1, 1], [], []>} : vector<64x128xf32>, vector<128x128xf32>, vector<64x128xf32> -> vector<64x128xf32>
    %c0_95 = arith.constant 0 : index
    %c0_96 = arith.constant 0 : index
    %183 = vector.load %arg7[%c0_95, %c0_96] : memref<1x128xf32, #tpu.memory_space<vmem>>, vector<1x128xf32>
    %184 = vector.broadcast %183 : vector<1x128xf32> to vector<64x128xf32>
    %185 = arith.addf %182, %184 : vector<64x128xf32>
    %cst_97 = arith.constant 0.000000e+00 : f32
    %186 = vector.broadcast %cst_97 : f32 to vector<64x128xf32>
    %187 = arith.maximumf %185, %186 : vector<64x128xf32>
    %c0_98 = arith.constant 0 : index
    %c0_99 = arith.constant 0 : index
    %188 = vector.load %arg8[%c0_98, %c0_99] : memref<128x128xf32, #tpu.memory_space<vmem>>, vector<128x128xf32>
    %cst_100 = arith.constant dense<0.000000e+00> : vector<64x128xf32>
    %189 = tpu.matmul %187, %188, %cst_100 {dimension_numbers = #tpu.dot_dimension_numbers<[1], [0], [0], [1], [0, 0, 1, 1], [], []>} : vector<64x128xf32>, vector<128x128xf32>, vector<64x128xf32> -> vector<64x128xf32>
    %c0_101 = arith.constant 0 : index
    %c0_102 = arith.constant 0 : index
    %190 = vector.load %arg9[%c0_101, %c0_102] : memref<1x128xf32, #tpu.memory_space<vmem>>, vector<1x128xf32>
    %191 = vector.broadcast %190 : vector<1x128xf32> to vector<64x128xf32>
    %192 = arith.addf %189, %191 : vector<64x128xf32>
    %cst_103 = arith.constant 0.000000e+00 : f32
    %193 = vector.broadcast %cst_103 : f32 to vector<64x128xf32>
    %194 = arith.maximumf %192, %193 : vector<64x128xf32>
    %c0_104 = arith.constant 0 : index
    %c0_105 = arith.constant 0 : index
    %195 = vector.load %arg10[%c0_104, %c0_105] : memref<128x128xf32, #tpu.memory_space<vmem>>, vector<128x128xf32>
    %cst_106 = arith.constant dense<0.000000e+00> : vector<64x128xf32>
    %196 = tpu.matmul %194, %195, %cst_106 {dimension_numbers = #tpu.dot_dimension_numbers<[1], [0], [0], [1], [0, 0, 1, 1], [], []>} : vector<64x128xf32>, vector<128x128xf32>, vector<64x128xf32> -> vector<64x128xf32>
    %c0_107 = arith.constant 0 : index
    %c0_108 = arith.constant 0 : index
    %197 = vector.load %arg11[%c0_107, %c0_108] : memref<1x128xf32, #tpu.memory_space<vmem>>, vector<1x128xf32>
    %198 = vector.broadcast %197 : vector<1x128xf32> to vector<64x128xf32>
    %199 = arith.addf %196, %198 : vector<64x128xf32>
    %200 = arith.addf %194, %199 : vector<64x128xf32>
    %201 = vector.shape_cast %200 : vector<64x128xf32> to vector<8x8x128xf32>
    %c0_109 = arith.constant 0 : index
    %c0_110 = arith.constant 0 : index
    %c0_111 = arith.constant 0 : index
    %202 = vector.load %arg12[%c0_109, %c0_110, %c0_111] : memref<8x8x128xf32, #tpu.memory_space<vmem>>, vector<8x8x128xf32>
    tpu.vector_store %arg12[%c0_109, %c0_110, %c0_111], %201 {strides = array<i32>} : memref<8x8x128xf32, #tpu.memory_space<vmem>>, vector<8x8x128xf32>,
    return
  }
  func.func @transform_0(%arg0: i32) -> (i32, i32, i32) {
    %c0_i32 = arith.constant 0 : i32
    %c0_i32_0 = arith.constant 0 : i32
    %c0_i32_1 = arith.constant 0 : i32
    return %c0_i32, %arg0, %c0_i32_0 : i32, i32, i32
  }
  func.func @transform_1(%arg0: i32) -> (i32, i32) {
    %c0_i32 = arith.constant 0 : i32
    %c0_i32_0 = arith.constant 0 : i32
    %c0_i32_1 = arith.constant 0 : i32
    return %c0_i32, %c0_i32_0 : i32, i32
  }
  func.func @transform_2(%arg0: i32) -> (i32, i32) {
    %c0_i32 = arith.constant 0 : i32
    %c0_i32_0 = arith.constant 0 : i32
    %c0_i32_1 = arith.constant 0 : i32
    return %c0_i32, %c0_i32_0 : i32, i32
  }
  func.func @transform_3(%arg0: i32) -> (i32, i32) {
    %c0_i32 = arith.constant 0 : i32
    %c0_i32_0 = arith.constant 0 : i32
    %c0_i32_1 = arith.constant 0 : i32
    return %c0_i32, %c0_i32_0 : i32, i32
  }
  func.func @transform_4(%arg0: i32) -> (i32, i32) {
    %c0_i32 = arith.constant 0 : i32
    %c0_i32_0 = arith.constant 0 : i32
    %c0_i32_1 = arith.constant 0 : i32
    return %c0_i32, %c0_i32_0 : i32, i32
  }
  func.func @transform_5(%arg0: i32) -> (i32, i32) {
    %c0_i32 = arith.constant 0 : i32
    %c0_i32_0 = arith.constant 0 : i32
    %c0_i32_1 = arith.constant 0 : i32
    return %c0_i32, %c0_i32_0 : i32, i32
  }
  func.func @transform_6(%arg0: i32) -> (i32, i32) {
    %c0_i32 = arith.constant 0 : i32
    %c0_i32_0 = arith.constant 0 : i32
    %c0_i32_1 = arith.constant 0 : i32
    return %c0_i32, %c0_i32_0 : i32, i32
  }
  func.func @transform_7(%arg0: i32) -> (i32, i32) {
    %c0_i32 = arith.constant 0 : i32
    %c0_i32_0 = arith.constant 0 : i32
    %c0_i32_1 = arith.constant 0 : i32
    return %c0_i32, %c0_i32_0 : i32, i32
  }
  func.func @transform_8(%arg0: i32) -> (i32, i32) {
    %c0_i32 = arith.constant 0 : i32
    %c0_i32_0 = arith.constant 0 : i32
    %c0_i32_1 = arith.constant 0 : i32
    return %c0_i32, %c0_i32_0 : i32, i32
  }
  func.func @transform_9(%arg0: i32) -> (i32, i32) {
    %c0_i32 = arith.constant 0 : i32
    %c0_i32_0 = arith.constant 0 : i32
    %c0_i32_1 = arith.constant 0 : i32
    return %c0_i32, %c0_i32_0 : i32, i32
  }
  func.func @transform_10(%arg0: i32) -> (i32, i32) {
    %c0_i32 = arith.constant 0 : i32
    %c0_i32_0 = arith.constant 0 : i32
    %c0_i32_1 = arith.constant 0 : i32
    return %c0_i32, %c0_i32_0 : i32, i32
  }
  func.func @transform_11(%arg0: i32) -> (i32, i32, i32) {
    %c0_i32 = arith.constant 0 : i32
    %c0_i32_0 = arith.constant 0 : i32
    %c0_i32_1 = arith.constant 0 : i32
    return %c0_i32, %arg0, %c0_i32_0 : i32, i32, i32
  }
}

</mosaic_0001>

<bundles_post_ra>
// kernel: critic_gru_forward.1
= control target key start
LH: loop header
LB: loop body
LE: loop exit
PB: predicated region body
PF: predicated region fallthrough
CT: control target
= control target key end

     0   :  { %v2512_v0 = vmov 0.0|0.0   ;;  %vm2513_vm0 = vmmov 0   ;;  %v2514_v4 = vmov 0.0   ;;  %vm55_vm1 = vcmask 130048   ;;  %s2515_s28 = smov 64   ;;  %s2516_s12 = smov 32   ;;  %s3149_s2 = inlined_call_operand.vmem [shape: f32[128,128], index: 2, kind: input, shape index: {}]   ;;  %s3150_s1 = inlined_call_operand.vmem [shape: f32[16,128], index: 1, kind: input, shape index: {}]   ;;  %s3151_s0 = inlined_call_operand.vmem [shape: f32[8,8,16], index: 0, kind: input, shape index: {}]   ;;  %s3152_s3 = inlined_call_operand.vmem [shape: f32[1,128], index: 3, kind: input, shape index: {}]   ;;  %s3153_s4 = inlined_call_operand.vmem [shape: f32[1,128], index: 4, kind: input, shape index: {}]   ;;  %s3154_s5 = inlined_call_operand.vmem [shape: f32[128,128], index: 5, kind: input, shape index: {}]   ;;  %s3155_s7 = inlined_call_operand.vmem [shape: f32[128,128], index: 7, kind: input, shape index: {}]   ;;  %s3156_s6 = inlined_call_operand.vmem [shape: f32[1,128], index: 6, kind: input, shape index: {}]   ;;  %s3157_s9 = inlined_call_operand.vmem [shape: f32[128,128], index: 9, kind: input, shape index: {}]   ;;  %s3158_s8 = inlined_call_operand.vmem [shape: f32[1,128], index: 8, kind: input, shape index: {}]   ;;  %s3159_s10 = inlined_call_operand.vmem [shape: f32[1,128], index: 10, kind: input, shape index: {}]   ;;  %s3160_s11 = inlined_call_operand.vmem [shape: f32[8,8,128], index: 11, kind: output, shape index: {}]  }
   0x1   :  { %2155 = vmatprep.subr.bf16.mxu1 %v2512_v0  ;;  %v201_v1 = vld [vmem:[%s3149_s2] sm:$0xff]  ;;  %v202_v2 = vld [vmem:[%s3149_s2 + $0x8] sm:$0xff]  ;;  %v203_v3 = vld [vmem:[%s3149_s2 + $0x10] sm:$0xff]  ;;  %1771 = vmatprep.mubr.msk.f32.mxu1 %vm2513_vm0, %v2514_v4 }
   0x2   :  { %v2589_v5 = vpack.c.bf16 %v202_v2, %v201_v1  ;;  %v204_v6 = vld [vmem:[%s3149_s2 + $0x18] sm:$0xff]  ;;  %v205_v8 = vld [vmem:[%s3149_s2 + $0x20] sm:$0xff]  ;;  %v206_v9 = vld [vmem:[%s3149_s2 + $0x28] sm:$0xff] }
   0x3   :  { %v2595_v7 = vpack.c.bf16 %v204_v6, %v203_v3  ;;  %v46_v10 = vld [vmem:[%s3150_s1] sm:$0xff]  ;;  %v47_v11 = vld [vmem:[%s3150_s1 + $0x8] sm:$0xff]  ;;  %v2615_v14 = vpack.c.bf16 %v206_v9, %v205_v8  ;;  %v207_v15 = vld [vmem:[%s3149_s2 + $0x30] sm:$0xff] }
   0x4   :  { %2157 = vmatpush3.bf16.msra.mxu1 %v2589_v5  ;;  %v2151_v12 = vpack.c.bf16 %v47_v11, %v46_v10  ;;  %v38_v13 = vld [vmem:[%s3151_s0] sm:$0xff]  ;;  %v208_v16 = vld [vmem:[%s3149_s2 + $0x38] sm:$0xff]  ;;  %v39_v17 = vld [vmem:[%s3151_s0 + $0x8] sm:$0xff] }
   0x5   :  { %2158 = vmatprep.subr.bf16.mxu1 %v2512_v0  ;;  %1727 = vmatprep.mubr.msk.f32.mxu0 %vm55_vm1, %v38_v13  ;;  %v2629_v18 = vpack.c.bf16 %v208_v16, %v207_v15  ;;  %v209_v19 = vld [vmem:[%s3149_s2 + $0x40] sm:$0xff]  ;;  %v210_v20 = vld [vmem:[%s3149_s2 + $0x48] sm:$0xff]  ;;  %v211_v22 = vld [vmem:[%s3149_s2 + $0x50] sm:$0xff] }
   0x6   :  { %2152 = vmatprep.subr.bf16.mxu0 %v2151_v12  ;;  %v2642_v21 = vpack.c.bf16 %v210_v20, %v209_v19  ;;  %v212_v23 = vld [vmem:[%s3149_s2 + $0x58] sm:$0xff]  ;;  %v213_v25 = vld [vmem:[%s3149_s2 + $0x60] sm:$0xff]  ;;  %v214_v26 = vld [vmem:[%s3149_s2 + $0x68] sm:$0xff] }
   0x7   :  { %2154 = vmatpush3.bf16.msra.mxu0 %v2151_v12  ;;  %v2654_v24 = vpack.c.bf16 %v212_v23, %v211_v22  ;;  %v2666_v27 = vpack.c.bf16 %v214_v26, %v213_v25  ;;  %v215_v28 = vld [vmem:[%s3149_s2 + $0x70] sm:$0xff]  ;;  %v216_v29 = vld [vmem:[%s3149_s2 + $0x78] sm:$0xff]  ;;  %v2715_v33 = vld [vmem:[%s3152_s3] ss:$0 sm:$0xff] }
   0x8   :  { %2160 = vmatpush3.bf16.msra.mxu1 %v2595_v7  ;;  %2179 = vmatprep.subr.bf16.mxu0 %v2512_v0  ;;  %v2678_v30 = vpack.c.bf16 %v216_v29, %v215_v28  ;;  %v40_v41 = vld [vmem:[%s3151_s0 + $0x10] sm:$0xff]  ;;  %v41_v42 = vld [vmem:[%s3151_s0 + $0x18] sm:$0xff]  ;;  %v42_v43 = vld [vmem:[%s3151_s0 + $0x20] sm:$0xff] }
   0x9   :  { %2161 = vmatprep.subr.bf16.mxu1 %v2512_v0  ;;  %v43_v44 = vld [vmem:[%s3151_s0 + $0x28] sm:$0xff]  ;;  %v44_v46 = vld [vmem:[%s3151_s0 + $0x30] sm:$0xff]  ;;  %v45_v47 = vld [vmem:[%s3151_s0 + $0x38] sm:$0xff] }
   0xa   :  { %1728 = vmatmul.mubr.msk.f32.vlgmr.msra.gmra.mrb[0].mxu0 %vm55_vm1, %v39_v17  ;;  %v2749_v48 = vld [vmem:[%s3153_s4] ss:$0 sm:$0xff] }
   0xb   :  { %2181 = vmatpush3.bf16.msra.mxu0 %v2589_v5  ;;  %1730 = vmatprep.mubr.msk.f32.mxu0 %vm55_vm1, %v40_v41 }
   0xc   :  { %2163 = vmatpush3.bf16.msra.mxu1 %v2615_v14  ;;  %2182 = vmatprep.subr.bf16.mxu0 %v2512_v0 }
   0xd   :  { %2164 = vmatprep.subr.bf16.mxu1 %v2512_v0 }
   0xe   :  { %1731 = vmatmul.mubr.msk.f32.gmra.mrb[2].mxu0 %vm55_vm1, %v41_v42 }
   0xf   :  { %2184 = vmatpush3.bf16.msra.mxu0 %v2595_v7  ;;  %1733 = vmatprep.mubr.msk.f32.mxu0 %vm55_vm1, %v42_v43 }
  0x10   :  { %2166 = vmatpush3.bf16.msra.mxu1 %v2629_v18  ;;  %2185 = vmatprep.subr.bf16.mxu0 %v2512_v0 }
  0x11   :  { %2167 = vmatprep.subr.bf16.mxu1 %v2512_v0 }
  0x12   :  { %1734 = vmatmul.mubr.msk.f32.gmra.mrb[4].mxu0 %vm55_vm1, %v43_v44 }
  0x13   :  { %2187 = vmatpush3.bf16.msra.mxu0 %v2615_v14  ;;  %1736 = vmatprep.mubr.msk.f32.mxu0 %vm55_vm1, %v44_v46 }
  0x14   :  { %2169 = vmatpush3.bf16.msra.mxu1 %v2642_v21  ;;  %2188 = vmatprep.subr.bf16.mxu0 %v2512_v0 }
  0x15   :  { %2170 = vmatprep.subr.bf16.mxu1 %v2512_v0 }
  0x16   :  { %1737 = vmatmul.mubr.msk.f32.gmra.mrb[6].mxu0 %vm55_vm1, %v45_v47 }
  0x17   :  { %2190 = vmatpush3.bf16.msra.mxu0 %v2629_v18  ;;  %1806 = vmatprep.mubr.msk.f32.mxu0 %vm2513_vm0, %v2514_v4 }
  0x18   :  { %2172 = vmatpush3.bf16.msra.mxu1 %v2654_v24  ;;  %2191 = vmatprep.subr.bf16.mxu0 %v2512_v0 }
  0x19   :  { %2173 = vmatprep.subr.bf16.mxu1 %v2512_v0 }
  0x1b   :  { %2193 = vmatpush3.bf16.msra.mxu0 %v2642_v21 }
  0x1c   :  { %2175 = vmatpush3.bf16.msra.mxu1 %v2666_v27  ;;  %2194 = vmatprep.subr.bf16.mxu0 %v2512_v0 }
  0x1d   :  { %2176 = vmatprep.subr.bf16.mxu1 %v2512_v0 }
  0x1f   :  { %2196 = vmatpush3.bf16.msra.mxu0 %v2654_v24 }
  0x20   :  { %2178 = vmatpush3.bf16.msra.mxu1 %v2678_v30  ;;  %2197 = vmatprep.subr.bf16.mxu0 %v2512_v0 }
  0x21   :  { %2203 = vmatprep.subr.bf16.mxu1 %v2512_v0 }
  0x23   :  { %1772 = vmatmul.mubr.f32.vlgmr.msra.gmra.mrb[0].mxu1 %v2514_v4  ;;  %2199 = vmatpush3.bf16.msra.mxu0 %v2666_v27 }
  0x24   :  { %2205 = vmatpush3.bf16.msra.mxu1 %v2589_v5  ;;  %1841 = vmatprep.mubr.msk.f32.mxu1 %vm2513_vm0, %v2514_v4 }
  0x25   :  { %2206 = vmatprep.subr.bf16.mxu1 %v2512_v0  ;;  %2200 = vmatprep.subr.bf16.mxu0 %v2512_v0 }
  0x27   :  { %2202 = vmatpush3.bf16.msra.mxu0 %v2678_v30 }
  0x28   :  { %2208 = vmatpush3.bf16.msra.mxu1 %v2595_v7  ;;  %2227 = vmatprep.subr.bf16.mxu0 %v2512_v0 }
  0x29   :  { %2209 = vmatprep.subr.bf16.mxu1 %v2512_v0 }
  0x2c   :  { %2211 = vmatpush3.bf16.msra.mxu1 %v2615_v14 }
  0x2d   :  { %2212 = vmatprep.subr.bf16.mxu1 %v2512_v0 }
  0x30   :  { %2214 = vmatpush3.bf16.msra.mxu1 %v2629_v18 }
  0x31   :  { %2215 = vmatprep.subr.bf16.mxu1 %v2512_v0 }
  0x34   :  { %2217 = vmatpush3.bf16.msra.mxu1 %v2642_v21 }
  0x35   :  { %2218 = vmatprep.subr.bf16.mxu1 %v2512_v0 }
  0x38   :  { %2220 = vmatpush3.bf16.msra.mxu1 %v2654_v24 }
  0x39   :  { %2221 = vmatprep.subr.bf16.mxu1 %v2512_v0 }
  0x3c   :  { %2223 = vmatpush3.bf16.msra.mxu1 %v2666_v27 }
  0x3d   :  { %2224 = vmatprep.subr.bf16.mxu1 %v2512_v0 }
  0x40   :  { %2226 = vmatpush3.bf16.msra.mxu1 %v2678_v30 }
  0x41   :  { %2251 = vmatprep.subr.bf16.mxu1 %v2512_v0 }
  0xdd   :  { %v2710_v31 = vpop.f32.mrb[0].mxu0 }
  0xde   :  { %v146_v32 = vpop.f32.mrb[1].mxu0  ;;  %v152_v2 = vadd.f32 %v2710_v31, %v2715_v33 }
  0xdf   :  { %v147_v34 = vadd.f32 %v2715_v33, %v146_v32 }
  0xe1   :  { %v2773_v59 = vpop.f32.mrb[2].mxu0 }
  0xe2   :  { %v156_v60 = vpop.f32.mrb[3].mxu0 }
  0xe3   :  { %v157_v28 = vadd.f32 %v2715_v33, %v156_v60 }
  0xe5   :  { %v2775_v61 = vpop.f32.mrb[4].mxu0 }
  0xe6   :  { %v2777_v62 = vpop.f32.mrb[5].mxu0 }
  0xe9   :  { %v2779_v63 = vpop.f32.mrb[6].mxu0 }
  0xea   :  { %v2781_v1 = vpop.f32.mrb[7].mxu0 }
  0xf6   :  { %v283_v35 = vpop.f32.mrb[0].mxu1 }
  0xf7   :  { %v287_v36 = vadd.f32 %v283_v35, %v147_v34  ;;  %v1773_v37 = vpop.f32.mrb[1].mxu1  ;;  %v298_v49 = vadd.f32 %v2749_v48, %v283_v35 }
  0xf9   :  { %v1494_v38 = vmul.f32 -1.442695, %v287_v36 }
  0xfb   :  { %2464 = vpow2.f32 %v1494_v38 }
 0x105   :  { %v2465_v39 = vpop.eup %2464 }
 0x106   :  { %v291_v40 = vadd.f32 1.0, %v2465_v39 }
 0x108   :  { %2466 = vrcp.f32 %v291_v40 }
 0x112   :  { %v2467_v45 = vpop.eup %2466 }
 0x113   :  { %294 = vrot.lane.b32.xlu0 %v2467_v45, %s2515_s28 }
 0x117   :  { %296 = vrot.lane.b32.xlu0 %v2467_v45, %s2516_s12 }
 0x185   :  { %v295_v50 = vpop.permute.xlu0 %294 }
 0x186   :  { %v299_v51 = vmul.f32 %v298_v49, %v295_v50  ;;  %v162_v49 = vadd.f32 %v2773_v59, %v2715_v33 }
 0x188   :  { %v300_v52 = vadd.f32 %v299_v51, %v147_v34 }
 0x189   :  { %v297_v53 = vpop.permute.xlu0 %296 }
 0x18a   :  { %2468 = vtanh.f32 %v300_v52  ;;  %v302_v54 = vsub.f32 1.0, %v297_v53  ;;  %v304_v57 = vmul.f32 0.0, %v297_v53 }
 0x194   :  { %v2469_v55 = vpop.eup %2468 }
 0x195   :  { %v303_v56 = vmul.f32 %v2469_v55, %v302_v54 }
 0x197   :  { %v2752_v58 = vadd.f32 %v304_v57, %v303_v56 }
 0x199   :  { %1807 = vmatmul.mubr.f32.vlgmr.msra.gmra.mrb[8].mxu0 %v2752_v58 }
 0x19a   :  { %2229 = vmatpush3.bf16.msra.mxu0 %v2589_v5  ;;  %1876 = vmatprep.mubr.msk.f32.mxu0 %vm2513_vm0, %v2514_v4 }
 0x19b   :  { %2230 = vmatprep.subr.bf16.mxu0 %v2512_v0 }
 0x19e   :  { %2232 = vmatpush3.bf16.msra.mxu0 %v2595_v7 }
 0x19f   :  { %2233 = vmatprep.subr.bf16.mxu0 %v2512_v0 }
 0x1a2   :  { %2235 = vmatpush3.bf16.msra.mxu0 %v2615_v14 }
 0x1a3   :  { %2236 = vmatprep.subr.bf16.mxu0 %v2512_v0 }
 0x1a6   :  { %2238 = vmatpush3.bf16.msra.mxu0 %v2629_v18 }
 0x1a7   :  { %2239 = vmatprep.subr.bf16.mxu0 %v2512_v0 }
 0x1aa   :  { %2241 = vmatpush3.bf16.msra.mxu0 %v2642_v21 }
 0x1ab   :  { %2242 = vmatprep.subr.bf16.mxu0 %v2512_v0 }
 0x1ae   :  { %2244 = vmatpush3.bf16.msra.mxu0 %v2654_v24 }
 0x1af   :  { %2245 = vmatprep.subr.bf16.mxu0 %v2512_v0 }
 0x1b2   :  { %2247 = vmatpush3.bf16.msra.mxu0 %v2666_v27 }
 0x1b3   :  { %2248 = vmatprep.subr.bf16.mxu0 %v2512_v0 }
 0x1b6   :  { %2250 = vmatpush3.bf16.msra.mxu0 %v2678_v30 }
 0x1b7   :  { %2275 = vmatprep.subr.bf16.mxu0 %v2512_v0 }
 0x26c   :  { %v390_v3 = vpop.f32.mrb[8].mxu0 }
 0x26d   :  { %v394_v6 = vadd.f32 %v390_v3, %v152_v2  ;;  %v1808_v8 = vpop.f32.mrb[9].mxu0  ;;  %v405_v13 = vadd.f32 %v2749_v48, %v390_v3 }
 0x26f   :  { %v1495_v9 = vmul.f32 -1.442695, %v394_v6 }
 0x271   :  { %2470 = vpow2.f32 %v1495_v9 }
 0x27b   :  { %v2471_v10 = vpop.eup %2470 }
 0x27c   :  { %v398_v11 = vadd.f32 1.0, %v2471_v10 }
 0x27e   :  { %2472 = vrcp.f32 %v398_v11 }
 0x288   :  { %v2473_v12 = vpop.eup %2472 }
 0x289   :  { %401 = vrot.lane.b32.xlu1 %v2473_v12, %s2515_s28 }
 0x28d   :  { %403 = vrot.lane.b32.xlu1 %v2473_v12, %s2516_s12 }
 0x2fb   :  { %v402_v15 = vpop.permute.xlu1 %401 }
 0x2fc   :  { %v406_v16 = vmul.f32 %v405_v13, %v402_v15 }
 0x2fe   :  { %v407_v17 = vadd.f32 %v406_v16, %v152_v2 }
 0x2ff   :  { %v404_v19 = vpop.permute.xlu1 %403 }
 0x300   :  { %2474 = vtanh.f32 %v407_v17  ;;  %v409_v20 = vsub.f32 1.0, %v404_v19  ;;  %v411_v25 = vmul.f32 %v404_v19, %v2752_v58 }
 0x30a   :  { %v2475_v22 = vpop.eup %2474 }
 0x30b   :  { %v410_v23 = vmul.f32 %v2475_v22, %v409_v20 }
 0x30d   :  { %v2789_v26 = vadd.f32 %v411_v25, %v410_v23  ;;  %v172_v25 = vadd.f32 %v2775_v61, %v2715_v33 }
 0x30f   :  { %1842 = vmatmul.mubr.f32.vlgmr.msra.gmra.mrb[2].mxu1 %v2789_v26 }
 0x310   :  { %2253 = vmatpush3.bf16.msra.mxu1 %v2589_v5  ;;  %1911 = vmatprep.mubr.msk.f32.mxu1 %vm2513_vm0, %v2514_v4 }
 0x311   :  { %2254 = vmatprep.subr.bf16.mxu1 %v2512_v0 }
 0x314   :  { %2256 = vmatpush3.bf16.msra.mxu1 %v2595_v7 }
 0x315   :  { %2257 = vmatprep.subr.bf16.mxu1 %v2512_v0 }
 0x318   :  { %2259 = vmatpush3.bf16.msra.mxu1 %v2615_v14 }
 0x319   :  { %2260 = vmatprep.subr.bf16.mxu1 %v2512_v0 }
 0x31c   :  { %2262 = vmatpush3.bf16.msra.mxu1 %v2629_v18 }
 0x31d   :  { %2263 = vmatprep.subr.bf16.mxu1 %v2512_v0 }
 0x320   :  { %2265 = vmatpush3.bf16.msra.mxu1 %v2642_v21 }
 0x321   :  { %2266 = vmatprep.subr.bf16.mxu1 %v2512_v0 }
 0x324   :  { %2268 = vmatpush3.bf16.msra.mxu1 %v2654_v24 }
 0x325   :  { %2269 = vmatprep.subr.bf16.mxu1 %v2512_v0 }
 0x328   :  { %2271 = vmatpush3.bf16.msra.mxu1 %v2666_v27 }
 0x329   :  { %2272 = vmatprep.subr.bf16.mxu1 %v2512_v0 }
 0x32c   :  { %2274 = vmatpush3.bf16.msra.mxu1 %v2678_v30 }
 0x32d   :  { %2299 = vmatprep.subr.bf16.mxu1 %v2512_v0 }
 0x3e2   :  { %v497_v29 = vpop.f32.mrb[2].mxu1 }
 0x3e3   :  { %v501_v31 = vadd.f32 %v497_v29, %v157_v28  ;;  %v1843_v32 = vpop.f32.mrb[3].mxu1  ;;  %v512_v38 = vadd.f32 %v2749_v48, %v497_v29 }
 0x3e5   :  { %v1496_v34 = vmul.f32 -1.442695, %v501_v31 }
 0x3e7   :  { %2476 = vpow2.f32 %v1496_v34 }
 0x3f1   :  { %v2477_v35 = vpop.eup %2476 }
 0x3f2   :  { %v505_v36 = vadd.f32 1.0, %v2477_v35 }
 0x3f4   :  { %2478 = vrcp.f32 %v505_v36  ;;  %v1064_v36 = vld [vmem:[%s3154_s5] sm:$0xff] }
 0x3fe   :  { %v2479_v37 = vpop.eup %2478 }
 0x3ff   :  { %510 = vrot.lane.b32.xlu1 %v2479_v37, %s2516_s12  ;;  %508 = vrot.lane.b32.xlu0 %v2479_v37, %s2515_s28  ;;  %v1065_v37 = vld [vmem:[%s3154_s5 + $0x8] sm:$0xff] }
 0x471   :  { %v509_v39 = vpop.permute.xlu0 %508  ;;  %v511_v42 = vpop.permute.xlu1 %510 }
 0x472   :  { %v513_v40 = vmul.f32 %v512_v38, %v509_v39  ;;  %v516_v43 = vsub.f32 1.0, %v511_v42  ;;  %v518_v45 = vmul.f32 %v511_v42, %v2789_v26 }
 0x474   :  { %v514_v41 = vadd.f32 %v513_v40, %v157_v28 }
 0x476   :  { %2480 = vtanh.f32 %v514_v41 }
 0x480   :  { %v2481_v44 = vpop.eup %2480 }
 0x481   :  { %v517_v46 = vmul.f32 %v2481_v44, %v516_v43 }
 0x483   :  { %v2815_v47 = vadd.f32 %v518_v45, %v517_v46  ;;  %v1066_v45 = vld [vmem:[%s3154_s5 + $0x10] sm:$0xff]  ;;  %v1067_v46 = vld [vmem:[%s3154_s5 + $0x18] sm:$0xff] }
 0x485   :  { %1877 = vmatmul.mubr.f32.vlgmr.msra.gmra.mrb[10].mxu0 %v2815_v47 }
 0x486   :  { %2277 = vmatpush3.bf16.msra.mxu0 %v2589_v5  ;;  %1946 = vmatprep.mubr.msk.f32.mxu0 %vm2513_vm0, %v2514_v4 }
 0x487   :  { %2278 = vmatprep.subr.bf16.mxu0 %v2512_v0 }
 0x48a   :  { %2280 = vmatpush3.bf16.msra.mxu0 %v2595_v7 }
 0x48b   :  { %2281 = vmatprep.subr.bf16.mxu0 %v2512_v0 }
 0x48e   :  { %2283 = vmatpush3.bf16.msra.mxu0 %v2615_v14 }
 0x48f   :  { %2284 = vmatprep.subr.bf16.mxu0 %v2512_v0 }
 0x492   :  { %2286 = vmatpush3.bf16.msra.mxu0 %v2629_v18 }
 0x493   :  { %2287 = vmatprep.subr.bf16.mxu0 %v2512_v0 }
 0x496   :  { %2289 = vmatpush3.bf16.msra.mxu0 %v2642_v21 }
 0x497   :  { %2290 = vmatprep.subr.bf16.mxu0 %v2512_v0 }
 0x49a   :  { %2292 = vmatpush3.bf16.msra.mxu0 %v2654_v24 }
 0x49b   :  { %2293 = vmatprep.subr.bf16.mxu0 %v2512_v0 }
 0x49e   :  { %2295 = vmatpush3.bf16.msra.mxu0 %v2666_v27 }
 0x49f   :  { %2296 = vmatprep.subr.bf16.mxu0 %v2512_v0 }
 0x4a2   :  { %2298 = vmatpush3.bf16.msra.mxu0 %v2678_v30 }
 0x4a3   :  { %2323 = vmatprep.subr.bf16.mxu0 %v2512_v0 }
 0x558   :  { %v604_v50 = vpop.f32.mrb[10].mxu0 }
 0x559   :  { %v608_v51 = vadd.f32 %v604_v50, %v162_v49  ;;  %v1878_v52 = vpop.f32.mrb[11].mxu0  ;;  %v619_v57 = vadd.f32 %v2749_v48, %v604_v50 }
 0x55a   :  { %v2351_v52 = vpack.c.bf16 %v1067_v46, %v1066_v45 }
 0x55b   :  { %v1497_v53 = vmul.f32 -1.442695, %v608_v51 }
 0x55d   :  { %2482 = vpow2.f32 %v1497_v53  ;;  %v1068_v53 = vld [vmem:[%s3154_s5 + $0x20] sm:$0xff] }
 0x567   :  { %v2483_v54 = vpop.eup %2482 }
 0x568   :  { %v612_v55 = vadd.f32 1.0, %v2483_v54  ;;  %v1069_v54 = vld [vmem:[%s3154_s5 + $0x28] sm:$0xff] }
 0x56a   :  { %2484 = vrcp.f32 %v612_v55  ;;  %v2355_v55 = vpack.c.bf16 %v1069_v54, %v1068_v53 }
 0x574   :  { %v2485_v56 = vpop.eup %2484 }
 0x575   :  { %617 = vrot.lane.b32.xlu1 %v2485_v56, %s2516_s12  ;;  %615 = vrot.lane.b32.xlu0 %v2485_v56, %s2515_s28  ;;  %v1070_v56 = vld [vmem:[%s3154_s5 + $0x30] sm:$0xff] }
 0x5e7   :  { %v616_v60 = vpop.permute.xlu0 %615  ;;  %v618_v59 = vpop.permute.xlu1 %617 }
 0x5e8   :  { %v620_v2 = vmul.f32 %v619_v57, %v616_v60  ;;  %v623_v6 = vsub.f32 1.0, %v618_v59  ;;  %v625_v9 = vmul.f32 %v618_v59, %v2815_v47  ;;  %v1071_v57 = vld [vmem:[%s3154_s5 + $0x38] sm:$0xff]  ;;  %v1074_v59 = vld [vmem:[%s3154_s5 + $0x50] sm:$0xff] }
 0x5e9   :  { %v2359_v60 = vpack.c.bf16 %v1071_v57, %v1070_v56 }
 0x5ea   :  { %v621_v3 = vadd.f32 %v620_v2, %v162_v49  ;;  %v1072_v2 = vld [vmem:[%s3154_s5 + $0x40] sm:$0xff] }
 0x5ec   :  { %2486 = vtanh.f32 %v621_v3 }
 0x5f6   :  { %v2487_v8 = vpop.eup %2486 }
 0x5f7   :  { %v624_v10 = vmul.f32 %v2487_v8, %v623_v6  ;;  %v1075_v6 = vld [vmem:[%s3154_s5 + $0x58] sm:$0xff] }
 0x5f8   :  { %v2367_v8 = vpack.c.bf16 %v1075_v6, %v1074_v59  ;;  %v1203_v59 = vld [vmem:[%s3155_s7 + $0x18] sm:$0xff] }
 0x5f9   :  { %v2842_v11 = vadd.f32 %v625_v9, %v624_v10  ;;  %v1076_v9 = vld [vmem:[%s3154_s5 + $0x60] sm:$0xff]  ;;  %v1077_v10 = vld [vmem:[%s3154_s5 + $0x68] sm:$0xff] }
 0x5fb   :  { %1912 = vmatmul.mubr.f32.vlgmr.msra.gmra.mrb[4].mxu1 %v2842_v11 }
 0x5fc   :  { %2301 = vmatpush3.bf16.msra.mxu1 %v2589_v5  ;;  %1981 = vmatprep.mubr.msk.f32.mxu1 %vm2513_vm0, %v2514_v4  ;;  %v167_v5 = vadd.f32 %v2715_v33, %v2777_v62 }
 0x5fd   :  { %2302 = vmatprep.subr.bf16.mxu1 %v2512_v0 }
 0x600   :  { %2304 = vmatpush3.bf16.msra.mxu1 %v2595_v7 }
 0x601   :  { %2305 = vmatprep.subr.bf16.mxu1 %v2512_v0 }
 0x604   :  { %2307 = vmatpush3.bf16.msra.mxu1 %v2615_v14 }
 0x605   :  { %2308 = vmatprep.subr.bf16.mxu1 %v2512_v0 }
 0x608   :  { %2310 = vmatpush3.bf16.msra.mxu1 %v2629_v18 }
 0x609   :  { %2311 = vmatprep.subr.bf16.mxu1 %v2512_v0 }
 0x60c   :  { %2313 = vmatpush3.bf16.msra.mxu1 %v2642_v21 }
 0x60d   :  { %2314 = vmatprep.subr.bf16.mxu1 %v2512_v0 }
 0x610   :  { %2316 = vmatpush3.bf16.msra.mxu1 %v2654_v24 }
 0x611   :  { %2317 = vmatprep.subr.bf16.mxu1 %v2512_v0 }
 0x614   :  { %2319 = vmatpush3.bf16.msra.mxu1 %v2666_v27 }
 0x615   :  { %2320 = vmatprep.subr.bf16.mxu1 %v2512_v0 }
 0x618   :  { %2322 = vmatpush3.bf16.msra.mxu1 %v2678_v30 }
 0x6ce   :  { %v711_v7 = vpop.f32.mrb[4].mxu1 }
 0x6cf   :  { %v715_v14 = vadd.f32 %v711_v7, %v167_v5  ;;  %v1913_v18 = vpop.f32.mrb[5].mxu1  ;;  %v726_v27 = vadd.f32 %v2749_v48, %v711_v7  ;;  %v1078_v7 = vld [vmem:[%s3154_s5 + $0x70] sm:$0xff] }
 0x6d1   :  { %v1498_v12 = vmul.f32 -1.442695, %v715_v14  ;;  %v1079_v14 = vld [vmem:[%s3154_s5 + $0x78] sm:$0xff] }
 0x6d2   :  { %v2375_v18 = vpack.c.bf16 %v1079_v14, %v1078_v7  ;;  %v1204_v7 = vld [vmem:[%s3155_s7 + $0x20] sm:$0xff]  ;;  %v1205_v14 = vld [vmem:[%s3155_s7 + $0x28] sm:$0xff] }
 0x6d3   :  { %2488 = vpow2.f32 %v1498_v12  ;;  %v950_v12 = vld [vmem:[%s3149_s2] sm:$0xff] }
 0x6dd   :  { %v2489_v21 = vpop.eup %2488 }
 0x6de   :  { %v719_v13 = vadd.f32 1.0, %v2489_v21  ;;  %v951_v21 = vld [vmem:[%s3149_s2 + $0x8] sm:$0xff] }
 0x6e0   :  { %2490 = vrcp.f32 %v719_v13  ;;  %v2324_v13 = vpack.c.bf16 %v951_v21, %v950_v12  ;;  %v1207_v12 = vld [vmem:[%s3155_s7 + $0x38] sm:$0xff] }
 0x6ea   :  { %v2491_v24 = vpop.eup %2490 }
 0x6eb   :  { %724 = vrot.lane.b32.xlu1 %v2491_v24, %s2516_s12  ;;  %722 = vrot.lane.b32.xlu0 %v2491_v24, %s2515_s28  ;;  %v954_v24 = vld [vmem:[%s3149_s2 + $0x20] sm:$0xff] }
 0x75d   :  { %v723_v15 = vpop.permute.xlu0 %722  ;;  %v725_v62 = vpop.permute.xlu1 %724 }
 0x75e   :  { %v727_v30 = vmul.f32 %v726_v27, %v723_v15  ;;  %v730_v17 = vsub.f32 1.0, %v725_v62  ;;  %v732_v20 = vmul.f32 %v725_v62, %v2842_v11  ;;  %v955_v27 = vld [vmem:[%s3149_s2 + $0x28] sm:$0xff] }
 0x75f   :  { %v2330_v15 = vpack.c.bf16 %v955_v27, %v954_v24  ;;  %v1211_v24 = vld [vmem:[%s3155_s7 + $0x58] sm:$0xff] }
 0x760   :  { %v728_v16 = vadd.f32 %v727_v30, %v167_v5  ;;  %v2371_v5 = vpack.c.bf16 %v1077_v10, %v1076_v9  ;;  %v956_v30 = vld [vmem:[%s3149_s2 + $0x30] sm:$0xff] }
 0x762   :  { %2492 = vtanh.f32 %v728_v16  ;;  %v957_v16 = vld [vmem:[%s3149_s2 + $0x38] sm:$0xff] }
 0x763   :  { %v2333_v62 = vpack.c.bf16 %v957_v16, %v956_v30  ;;  %v1213_v30 = vld [vmem:[%s3155_s7 + $0x68] sm:$0xff] }
 0x76c   :  { %v2493_v19 = vpop.eup %2492 }
 0x76d   :  { %v731_v22 = vmul.f32 %v2493_v19, %v730_v17  ;;  %v177_v17 = vadd.f32 %v2715_v33, %v2781_v1  ;;  %v960_v1 = vld [vmem:[%s3149_s2 + $0x50] sm:$0xff] }
 0x76f   :  { %v2868_v23 = vadd.f32 %v732_v20, %v731_v22 }
 0x771   :  { %1947 = vmatmul.mubr.f32.vlgmr.msra.gmra.mrb[12].mxu0 %v2868_v23 }
 0x772   :  { %2016 = vmatprep.mubr.msk.f32.mxu0 %vm2513_vm0, %v2514_v4  ;;  %v2347_v4 = vpack.c.bf16 %v1065_v37, %v1064_v36  ;;  %2325 = vmatpush3.bf16.msra.mxu0 %v2324_v13  ;;  %v962_v36 = vld [vmem:[%s3149_s2 + $0x60] sm:$0xff]  ;;  %v963_v37 = vld [vmem:[%s3149_s2 + $0x68] sm:$0xff] }
 0x773   :  { %2326 = vmatprep.subr.bf16.mxu0 %v2512_v0  ;;  %v1209_v13 = vld [vmem:[%s3155_s7 + $0x48] sm:$0xff] }
 0x774   :  { %2348 = vmatprep.subr.bf16.mxu1 %v2347_v4 }
 0x844   :  { %v818_v28 = vpop.f32.mrb[12].mxu0 }
 0x845   :  { %v822_v29 = vadd.f32 %v818_v28, %v172_v25  ;;  %v1948_v31 = vpop.f32.mrb[13].mxu0  ;;  %v833_v61 = vadd.f32 %v2749_v48, %v818_v28 }
 0x846   :  { %v959_v31 = vld [vmem:[%s3149_s2 + $0x48] sm:$0xff] }
 0x847   :  { %v1499_v32 = vmul.f32 -1.442695, %v822_v29  ;;  %v958_v29 = vld [vmem:[%s3149_s2 + $0x40] sm:$0xff] }
 0x849   :  { %2494 = vpow2.f32 %v1499_v32  ;;  %v2336_v32 = vpack.c.bf16 %v959_v31, %v958_v29 }
 0x853   :  { %v2495_v34 = vpop.eup %2494 }
 0x854   :  { %v826_v35 = vadd.f32 1.0, %v2495_v34  ;;  %v961_v34 = vld [vmem:[%s3149_s2 + $0x58] sm:$0xff] }
 0x856   :  { %2496 = vrcp.f32 %v826_v35  ;;  %v2339_v35 = vpack.c.bf16 %v961_v34, %v960_v1 }
 0x860   :  { %v2497_v38 = vpop.eup %2496 }
 0x861   :  { %831 = vrot.lane.b32.xlu1 %v2497_v38, %s2516_s12  ;;  %829 = vrot.lane.b32.xlu0 %v2497_v38, %s2515_s28  ;;  %v964_v38 = vld [vmem:[%s3149_s2 + $0x70] sm:$0xff] }
 0x8d3   :  { %v830_v39 = vpop.permute.xlu0 %829  ;;  %v832_v42 = vpop.permute.xlu1 %831 }
 0x8d4   :  { %v834_v40 = vmul.f32 %v833_v61, %v830_v39  ;;  %v837_v43 = vsub.f32 1.0, %v832_v42  ;;  %v839_v49 = vmul.f32 %v832_v42, %v2868_v23  ;;  %v965_v61 = vld [vmem:[%s3149_s2 + $0x78] sm:$0xff]  ;;  %v1200_v39 = vld [vmem:[%s3155_s7] sm:$0xff] }
 0x8d5   :  { %v2345_v42 = vpack.c.bf16 %v965_v61, %v964_v38  ;;  %v1339_v38 = vld [vmem:[%s3157_s9 + $0x18] sm:$0xff] }
 0x8d6   :  { %v835_v41 = vadd.f32 %v834_v40, %v172_v25  ;;  %v1201_v40 = vld [vmem:[%s3155_s7 + $0x8] sm:$0xff] }
 0x8d8   :  { %2498 = vtanh.f32 %v835_v41 }
 0x8e2   :  { %v2499_v44 = vpop.eup %2498 }
 0x8e3   :  { %v838_v50 = vmul.f32 %v2499_v44, %v837_v43  ;;  %v2379_v43 = vpack.c.bf16 %v1201_v40, %v1200_v39  ;;  %v1340_v39 = vld [vmem:[%s3157_s9 + $0x20] sm:$0xff]  ;;  %v1341_v40 = vld [vmem:[%s3157_s9 + $0x28] sm:$0xff] }
 0x8e5   :  { %v2891_v51 = vadd.f32 %v839_v49, %v838_v50 }
 0x8e7   :  { %1982 = vmatmul.mubr.f32.vlgmr.msra.gmra.mrb[6].mxu1 %v2891_v51 }
 0x8e8   :  { %2350 = vmatpush3.bf16.msra.mxu1 %v2347_v4  ;;  %2051 = vmatprep.mubr.f32.mxu1 %v2752_v58  ;;  %v1073_v58 = vld [vmem:[%s3154_s5 + $0x48] sm:$0xff]  ;;  %v2342_v4 = vpack.c.bf16 %v963_v37, %v962_v36  ;;  %v1338_v37 = vld [vmem:[%s3157_s9 + $0x10] sm:$0xff] }
 0x8e9   :  { %2352 = vmatprep.subr.bf16.mxu1 %v2351_v52  ;;  %v2363_v3 = vpack.c.bf16 %v1073_v58, %v1072_v2  ;;  %v1337_v36 = vld [vmem:[%s3157_s9 + $0x8] sm:$0xff]  ;;  %v2415_v61 = vpack.c.bf16 %v1339_v38, %v1338_v37 }
 0x8ec   :  { %2354 = vmatpush3.bf16.msra.mxu1 %v2351_v52 }
 0x8ed   :  { %2356 = vmatprep.subr.bf16.mxu1 %v2355_v55 }
 0x8f0   :  { %2358 = vmatpush3.bf16.msra.mxu1 %v2355_v55 }
 0x8f1   :  { %2360 = vmatprep.subr.bf16.mxu1 %v2359_v60 }
 0x8f4   :  { %2362 = vmatpush3.bf16.msra.mxu1 %v2359_v60 }
 0x8f5   :  { %2364 = vmatprep.subr.bf16.mxu1 %v2363_v3 }
 0x8f8   :  { %2366 = vmatpush3.bf16.msra.mxu1 %v2363_v3  ;;  %v1202_v3 = vld [vmem:[%s3155_s7 + $0x10] sm:$0xff] }
 0x8f9   :  { %2368 = vmatprep.subr.bf16.mxu1 %v2367_v8  ;;  %v2383_v10 = vpack.c.bf16 %v1203_v59, %v1202_v3 }
 0x8fc   :  { %2370 = vmatpush3.bf16.msra.mxu1 %v2367_v8 }
 0x8fd   :  { %2372 = vmatprep.subr.bf16.mxu1 %v2371_v5 }
 0x900   :  { %2374 = vmatpush3.bf16.msra.mxu1 %v2371_v5 }
 0x901   :  { %2376 = vmatprep.subr.bf16.mxu1 %v2375_v18 }
 0x904   :  { %2378 = vmatpush3.bf16.msra.mxu1 %v2375_v18  ;;  %v1206_v18 = vld [vmem:[%s3155_s7 + $0x30] sm:$0xff] }
 0x905   :  { %v2391_v21 = vpack.c.bf16 %v1207_v12, %v1206_v18 }
 0x907   :  { %2052 = vmatmul.mubr.f32.vlgmr.msra.gmra.mrb[8].mxu1 %v2789_v26  ;;  %v952_v26 = vld [vmem:[%s3149_s2 + $0x10] sm:$0xff] }
 0x908   :  { %2054 = vmatprep.mubr.f32.mxu1 %v2815_v47  ;;  %v953_v47 = vld [vmem:[%s3149_s2 + $0x18] sm:$0xff] }
 0x90b   :  { %2055 = vmatmul.mubr.f32.gmra.mrb[10].mxu1 %v2842_v11  ;;  %v2327_v11 = vpack.c.bf16 %v953_v47, %v952_v26  ;;  %v1208_v26 = vld [vmem:[%s3155_s7 + $0x40] sm:$0xff] }
 0x90c   :  { %2057 = vmatprep.mubr.f32.mxu1 %v2868_v23  ;;  %v2395_v47 = vpack.c.bf16 %v1209_v13, %v1208_v26 }
 0x90d   :  { %2328 = vmatpush3.bf16.msra.mxu0 %v2327_v11  ;;  %v1210_v11 = vld [vmem:[%s3155_s7 + $0x50] sm:$0xff] }
 0x90e   :  { %2329 = vmatprep.subr.bf16.mxu0 %v2512_v0  ;;  %v2399_v27 = vpack.c.bf16 %v1211_v24, %v1210_v11  ;;  %v1503_v24 = vld [vmem:[%s3158_s8] ss:$0 sm:$0xff] }
 0x90f   :  { %2058 = vmatmul.mubr.f32.gmra.mrb[12].mxu1 %v2891_v51 }
 0x911   :  { %2331 = vmatpush3.bf16.msra.mxu0 %v2330_v15  ;;  %v1212_v15 = vld [vmem:[%s3155_s7 + $0x60] sm:$0xff] }
 0x912   :  { %2332 = vmatprep.subr.bf16.mxu0 %v2512_v0  ;;  %v2403_v16 = vpack.c.bf16 %v1213_v30, %v1212_v15 }
 0x915   :  { %2334 = vmatpush3.bf16.msra.mxu0 %v2333_v62  ;;  %v1214_v62 = vld [vmem:[%s3155_s7 + $0x70] sm:$0xff] }
 0x916   :  { %2335 = vmatprep.subr.bf16.mxu0 %v2512_v0 }
 0x919   :  { %2337 = vmatpush3.bf16.msra.mxu0 %v2336_v32 }
 0x91a   :  { %2338 = vmatprep.subr.bf16.mxu0 %v2512_v0 }
 0x91d   :  { %2340 = vmatpush3.bf16.msra.mxu0 %v2339_v35  ;;  %v1336_v35 = vld [vmem:[%s3157_s9] sm:$0xff] }
 0x91e   :  { %2341 = vmatprep.subr.bf16.mxu0 %v2512_v0 }
 0x921   :  { %2343 = vmatpush3.bf16.msra.mxu0 %v2342_v4  ;;  %v2411_v4 = vpack.c.bf16 %v1337_v36, %v1336_v35 }
 0x922   :  { %2344 = vmatprep.subr.bf16.mxu0 %v2512_v0  ;;  %v3007_v0 = vld [vmem:[%s3156_s6] ss:$0 sm:$0xff] }
 0x923   :  { %2443 = vmatprep.subr.bf16.mxu1 %v2411_v4 }
 0x924   :  { %2451 = vmatpush3.bf16.msra.mxu1 %v2411_v4 }
 0x925   :  { %2346 = vmatpush3.bf16.msra.mxu0 %v2345_v42  ;;  %2444 = vmatprep.subr.bf16.mxu1 %v2415_v61  ;;  %v182_v42 = vadd.f32 %v2779_v63, %v2715_v33  ;;  %v1344_v33 = vld [vmem:[%s3157_s9 + $0x40] sm:$0xff]  ;;  %v1345_v63 = vld [vmem:[%s3157_s9 + $0x48] sm:$0xff] }
 0x926   :  { %2380 = vmatprep.subr.bf16.mxu0 %v2379_v43 }
 0x928   :  { %2452 = vmatpush3.bf16.msra.mxu1 %v2415_v61 }
 0x9ba   :  { %v925_v19 = vpop.f32.mrb[6].mxu1 }
 0x9bb   :  { %v929_v20 = vadd.f32 %v925_v19, %v177_v17  ;;  %v1983_v22 = vpop.f32.mrb[7].mxu1  ;;  %v940_v53 = vadd.f32 %v2749_v48, %v925_v19 }
 0x9bd   :  { %v1500_v23 = vmul.f32 -1.442695, %v929_v20 }
 0x9bf   :  { %2500 = vpow2.f32 %v1500_v23 }
 0x9c9   :  { %v2501_v25 = vpop.eup %2500 }
 0x9ca   :  { %v933_v28 = vadd.f32 1.0, %v2501_v25 }
 0x9cc   :  { %2502 = vrcp.f32 %v933_v28 }
 0x9d6   :  { %v2503_v41 = vpop.eup %2502 }
 0x9d7   :  { %938 = vrot.lane.b32.xlu1 %v2503_v41, %s2516_s12  ;;  %936 = vrot.lane.b32.xlu0 %v2503_v41, %s2515_s28  ;;  %v2419_v41 = vpack.c.bf16 %v1341_v40, %v1340_v39 }
 0x9d9   :  { %2445 = vmatprep.subr.bf16.mxu1 %v2419_v41 }
 0x9da   :  { %v2053_v44 = vpop.f32.mrb[8].mxu1  ;;  %2453 = vmatpush3.bf16.msra.mxu1 %v2419_v41 }
 0x9db   :  { %v1153_v45 = vpop.f32.mrb[9].mxu1  ;;  %v1159_v20 = vadd.f32 %v2053_v44, %v3007_v0 }
 0x9dc   :  { %v1154_v58 = vadd.f32 %v3007_v0, %v1153_v45 }
 0x9dd   :  { %v1193_v23 = vmax.f32 %v1159_v20, 0.0 }
 0x9de   :  { %v2056_v46 = vpop.f32.mrb[10].mxu1  ;;  %v1192_v5 = vmax.f32 %v1154_v58, 0.0  ;;  %v1349_v58 = vld [vmem:[%s3157_s9 + $0x68] sm:$0xff] }
 0x9df   :  { %v1163_v49 = vpop.f32.mrb[11].mxu1  ;;  %v1169_v25 = vadd.f32 %v2056_v46, %v3007_v0 }
 0x9e0   :  { %v1164_v22 = vadd.f32 %v3007_v0, %v1163_v49 }
 0x9e1   :  { %v1195_v31 = vmax.f32 %v1169_v25, 0.0 }
 0x9e2   :  { %v3001_v50 = vpop.f32.mrb[12].mxu1  ;;  %v1194_v28 = vmax.f32 %v1164_v22, 0.0 }
 0x9e3   :  { %v1173_v52 = vpop.f32.mrb[13].mxu1  ;;  %v1179_v32 = vadd.f32 %v3001_v50, %v3007_v0 }
 0x9e4   :  { %v1174_v29 = vadd.f32 %v3007_v0, %v1173_v52  ;;  %v1342_v52 = vld [vmem:[%s3157_s9 + $0x30] sm:$0xff] }
 0x9e5   :  { %v1197_v34 = vmax.f32 %v1179_v32, 0.0 }
 0x9e6   :  { %v1196_v1 = vmax.f32 %v1174_v29, 0.0 }
 0xa49   :  { %v937_v54 = vpop.permute.xlu0 %936  ;;  %v939_v57 = vpop.permute.xlu1 %938 }
 0xa4a   :  { %v941_v55 = vmul.f32 %v940_v53, %v937_v54  ;;  %v944_v60 = vsub.f32 1.0, %v939_v57  ;;  %v946_v6 = vmul.f32 %v939_v57, %v2891_v51  ;;  %v2387_v51 = vpack.c.bf16 %v1205_v14, %v1204_v7  ;;  %v1343_v53 = vld [vmem:[%s3157_s9 + $0x38] sm:$0xff] }
 0xa4b   :  { %v2423_v54 = vpack.c.bf16 %v1343_v53, %v1342_v52  ;;  %v1347_v57 = vld [vmem:[%s3157_s9 + $0x58] sm:$0xff] }
 0xa4c   :  { %v942_v56 = vadd.f32 %v941_v55, %v177_v17  ;;  %v1215_v17 = vld [vmem:[%s3155_s7 + $0x78] sm:$0xff]  ;;  %v1346_v55 = vld [vmem:[%s3157_s9 + $0x50] sm:$0xff] }
 0xa4d   :  { %v2407_v19 = vpack.c.bf16 %v1215_v17, %v1214_v62  ;;  %2446 = vmatprep.subr.bf16.mxu1 %v2423_v54 }
 0xa4e   :  { %2504 = vtanh.f32 %v942_v56  ;;  %2454 = vmatpush3.bf16.msra.mxu1 %v2423_v54  ;;  %v2427_v56 = vpack.c.bf16 %v1345_v63, %v1344_v33 }
 0xa50   :  { %2447 = vmatprep.subr.bf16.mxu1 %v2427_v56 }
 0xa52   :  { %2455 = vmatpush3.bf16.msra.mxu1 %v2427_v56 }
 0xa58   :  { %v2505_v2 = vpop.eup %2504 }
 0xa59   :  { %v945_v8 = vmul.f32 %v2505_v2, %v944_v60  ;;  %v2431_v60 = vpack.c.bf16 %v1347_v57, %v1346_v55  ;;  %v1348_v2 = vld [vmem:[%s3157_s9 + $0x60] sm:$0xff] }
 0xa5a   :  { %v2435_v3 = vpack.c.bf16 %v1349_v58, %v1348_v2 }
 0xa5b   :  { %v3017_v9 = vadd.f32 %v946_v6, %v945_v8  ;;  %2448 = vmatprep.subr.bf16.mxu1 %v2431_v60 }
 0xa5c   :  { %2456 = vmatpush3.bf16.msra.mxu1 %v2431_v60 }
 0xa5d   :  { %2017 = vmatmul.mubr.f32.vlgmr.msra.gmra.mrb[14].mxu0 %v3017_v9  ;;  %2060 = vmatprep.mubr.f32.mxu1 %v3017_v9 }
 0xa5e   :  { %2382 = vmatpush3.bf16.msra.mxu0 %v2379_v43  ;;  %2095 = vmatprep.mubr.f32.mxu0 %v1192_v5  ;;  %v1351_v5 = vld [vmem:[%s3157_s9 + $0x78] sm:$0xff] }
 0xa5f   :  { %2384 = vmatprep.subr.bf16.mxu0 %v2383_v10  ;;  %2449 = vmatprep.subr.bf16.mxu1 %v2435_v3 }
 0xa60   :  { %2457 = vmatpush3.bf16.msra.mxu1 %v2435_v3 }
 0xa62   :  { %2386 = vmatpush3.bf16.msra.mxu0 %v2383_v10  ;;  %v1350_v10 = vld [vmem:[%s3157_s9 + $0x70] sm:$0xff] }
 0xa63   :  { %2388 = vmatprep.subr.bf16.mxu0 %v2387_v51  ;;  %v2439_v7 = vpack.c.bf16 %v1351_v5, %v1350_v10 }
 0xa65   :  { %2450 = vmatprep.subr.bf16.mxu1 %v2439_v7 }
 0xa66   :  { %2390 = vmatpush3.bf16.msra.mxu0 %v2387_v51  ;;  %2458 = vmatpush3.bf16.msra.mxu1 %v2439_v7 }
 0xa67   :  { %2392 = vmatprep.subr.bf16.mxu0 %v2391_v21 }
 0xa6a   :  { %2394 = vmatpush3.bf16.msra.mxu0 %v2391_v21 }
 0xa6b   :  { %2396 = vmatprep.subr.bf16.mxu0 %v2395_v47 }
 0xa6e   :  { %2398 = vmatpush3.bf16.msra.mxu0 %v2395_v47 }
 0xa6f   :  { %2400 = vmatprep.subr.bf16.mxu0 %v2399_v27 }
 0xa72   :  { %2402 = vmatpush3.bf16.msra.mxu0 %v2399_v27 }
 0xa73   :  { %2404 = vmatprep.subr.bf16.mxu0 %v2403_v16 }
 0xa76   :  { %2406 = vmatpush3.bf16.msra.mxu0 %v2403_v16 }
 0xa77   :  { %2408 = vmatprep.subr.bf16.mxu0 %v2407_v19 }
 0xa7a   :  { %2410 = vmatpush3.bf16.msra.mxu0 %v2407_v19 }
 0xa7b   :  { %2412 = vmatprep.subr.bf16.mxu0 %v2411_v4 }
 0xa7d   :  { %2096 = vmatmul.mubr.f32.vlgmr.msra.gmra.mrb[16].mxu0 %v1193_v23 }
 0xa7e   :  { %2098 = vmatprep.mubr.f32.mxu0 %v1194_v28  ;;  %2414 = vmatpush3.bf16.msra.mxu0 %v2411_v4 }
 0xa7f   :  { %2416 = vmatprep.subr.bf16.mxu0 %v2415_v61 }
 0xa81   :  { %2099 = vmatmul.mubr.f32.gmra.mrb[18].mxu0 %v1195_v31 }
 0xa82   :  { %2101 = vmatprep.mubr.f32.mxu0 %v1196_v1  ;;  %2418 = vmatpush3.bf16.msra.mxu0 %v2415_v61 }
 0xa83   :  { %2420 = vmatprep.subr.bf16.mxu0 %v2419_v41 }
 0xa85   :  { %2102 = vmatmul.mubr.f32.gmra.mrb[20].mxu0 %v1197_v34  ;;  %v1504_v34 = vld [vmem:[%s3159_s10] ss:$0 sm:$0xff] }
 0xa86   :  { %2422 = vmatpush3.bf16.msra.mxu0 %v2419_v41 }
 0xa87   :  { %2424 = vmatprep.subr.bf16.mxu0 %v2423_v54 }
 0xa8a   :  { %2426 = vmatpush3.bf16.msra.mxu0 %v2423_v54 }
 0xa8b   :  { %2428 = vmatprep.subr.bf16.mxu0 %v2427_v56 }
 0xa8e   :  { %2430 = vmatpush3.bf16.msra.mxu0 %v2427_v56 }
 0xa8f   :  { %2432 = vmatprep.subr.bf16.mxu0 %v2431_v60 }
 0xa92   :  { %2434 = vmatpush3.bf16.msra.mxu0 %v2431_v60 }
 0xa93   :  { %2436 = vmatprep.subr.bf16.mxu0 %v2435_v3 }
 0xa96   :  { %2438 = vmatpush3.bf16.msra.mxu0 %v2435_v3 }
 0xa97   :  { %2440 = vmatprep.subr.bf16.mxu0 %v2439_v7 }
 0xa9a   :  { %2442 = vmatpush3.bf16.msra.mxu0 %v2439_v7 }
 0xb30   :  { %v1032_v43 = vpop.f32.mrb[14].mxu0 }
 0xb31   :  { %v1036_v44 = vadd.f32 %v1032_v43, %v182_v42  ;;  %v2018_v45 = vpop.f32.mrb[15].mxu0  ;;  %v1047_v21 = vadd.f32 %v2749_v48, %v1032_v43 }
 0xb33   :  { %v1501_v46 = vmul.f32 -1.442695, %v1036_v44 }
 0xb35   :  { %2506 = vpow2.f32 %v1501_v46 }
 0xb3f   :  { %v2507_v49 = vpop.eup %2506 }
 0xb40   :  { %v1040_v50 = vadd.f32 1.0, %v2507_v49 }
 0xb42   :  { %2508 = vrcp.f32 %v1040_v50 }
 0xb4c   :  { %v2509_v59 = vpop.eup %2508 }
 0xb4d   :  { %1045 = vrot.lane.b32.xlu1 %v2509_v59, %s2516_s12  ;;  %1043 = vrot.lane.b32.xlu0 %v2509_v59, %s2515_s28 }
 0xb50   :  { %v2097_v6 = vpop.f32.mrb[16].mxu0 }
 0xb51   :  { %v1289_v8 = vpop.f32.mrb[17].mxu0  ;;  %v1295_v37 = vadd.f32 %v2097_v6, %v1503_v24 }
 0xb52   :  { %v1290_v1 = vadd.f32 %v1503_v24, %v1289_v8 }
 0xb53   :  { %v1329_v44 = vmax.f32 %v1295_v37, 0.0 }
 0xb54   :  { %v2100_v14 = vpop.f32.mrb[18].mxu0  ;;  %v1328_v39 = vmax.f32 %v1290_v1, 0.0 }
 0xb55   :  { %v1299_v51 = vpop.f32.mrb[19].mxu0  ;;  %v1305_v17 = vadd.f32 %v2100_v14, %v1503_v24 }
 0xb56   :  { %v1300_v30 = vadd.f32 %v1503_v24, %v1299_v51 }
 0xb57   :  { %v1331_v48 = vmax.f32 %v1305_v17, 0.0 }
 0xb58   :  { %v2103_v18 = vpop.f32.mrb[20].mxu0  ;;  %v1330_v20 = vmax.f32 %v1300_v30, 0.0 }
 0xb59   :  { %v1309_v12 = vpop.f32.mrb[21].mxu0  ;;  %v1315_v23 = vadd.f32 %v2103_v18, %v1503_v24 }
 0xb5a   :  { %v1310_v22 = vadd.f32 %v1503_v24, %v1309_v12 }
 0xb5b   :  { %v1333_v28 = vmax.f32 %v1315_v23, 0.0 }
 0xb5c   :  { %v1332_v25 = vmax.f32 %v1310_v22, 0.0 }
 0xbbf   :  { %v1044_v26 = vpop.permute.xlu0 %1043  ;;  %v1046_v11 = vpop.permute.xlu1 %1045 }
 0xbc0   :  { %v1048_v13 = vmul.f32 %v1047_v21, %v1044_v26  ;;  %v1051_v27 = vsub.f32 1.0, %v1046_v11  ;;  %v1053_v16 = vmul.f32 %v1046_v11, %v3017_v9 }
 0xbc2   :  { %v1049_v47 = vadd.f32 %v1048_v13, %v182_v42 }
 0xbc4   :  { %2510 = vtanh.f32 %v1049_v47 }
 0xbce   :  { %v2511_v15 = vpop.eup %2510 }
 0xbcf   :  { %v1052_v62 = vmul.f32 %v2511_v15, %v1051_v27 }
 0xbd1   :  { %v1054_v19 = vadd.f32 %v1053_v16, %v1052_v62 }
 0xbd3   :  { %2061 = vmatmul.mubr.f32.gmra.mrb[14].mxu1 %v1054_v19 }
 0xbd4   :  { %2142 = vmatprep.mubr.f32.mxu1 %v1330_v20 }
 0xbd7   :  { %2143 = vmatmul.mubr.f32.vlgmr.msra.gmra.mrb[16].mxu1 %v1331_v48 }
 0xbd8   :  { %2145 = vmatprep.mubr.f32.mxu1 %v1332_v25 }
 0xbdb   :  { %2146 = vmatmul.mubr.f32.gmra.mrb[18].mxu1 %v1333_v28 }
 0xca6   :  { %v2062_v29 = vpop.f32.mrb[14].mxu1 }
 0xca7   :  { %v1189_v31 = vadd.f32 %v2062_v29, %v3007_v0  ;;  %v1183_v32 = vpop.f32.mrb[15].mxu1 }
 0xca8   :  { %v1184_v9 = vadd.f32 %v3007_v0, %v1183_v32 }
 0xca9   :  { %v1199_v4 = vmax.f32 %v1189_v31, 0.0 }
 0xcaa   :  { %v1198_v35 = vmax.f32 %v1184_v9, 0.0  ;;  %v2144_v36 = vpop.f32.mrb[16].mxu1 }
 0xcab   :  { %v1441_v38 = vadd.f32 %v2144_v36, %v1504_v34  ;;  %v1435_v61 = vpop.f32.mrb[17].mxu1 }
 0xcac   :  { %v1436_v40 = vadd.f32 %v1504_v34, %v1435_v61  ;;  %2104 = vmatprep.mubr.f32.mxu0 %v1198_v35 }
 0xcad   :  { %v1467_v41 = vadd.f32 %v1441_v38, %v1331_v48  ;;  %2105 = vmatmul.mubr.f32.gmra.mrb[22].mxu0 %v1199_v4 }
 0xcae   :  { %v1466_v42 = vadd.f32 %v1436_v40, %v1330_v20  ;;  %2139 = vmatprep.mubr.f32.mxu0 %v1328_v39  ;;  %v2147_v43 = vpop.f32.mrb[18].mxu1 }
 0xcaf   :  { %1475 = vst [vmem:[%s3160_s11 + $0x18] sm:$0xff] %v1467_v41  ;;  %v1451_v0 = vadd.f32 %v2147_v43, %v1504_v34  ;;  %v1445_v45 = vpop.f32.mrb[19].mxu1 }
 0xcb0   :  { %1474 = vst [vmem:[%s3160_s11 + $0x10] sm:$0xff] %v1466_v42  ;;  %v1446_v46 = vadd.f32 %v1504_v34, %v1445_v45 }
 0xcb1   :  { %v1469_v49 = vadd.f32 %v1451_v0, %v1333_v28  ;;  %2140 = vmatmul.mubr.f32.vlgmr.msra.gmra.mrb[24].mxu0 %v1329_v44 }
 0xcb2   :  { %v1468_v50 = vadd.f32 %v1446_v46, %v1332_v25 }
 0xcb3   :  { %1477 = vst [vmem:[%s3160_s11 + $0x28] sm:$0xff] %v1469_v49 }
 0xcb4   :  { %1476 = vst [vmem:[%s3160_s11 + $0x20] sm:$0xff] %v1468_v50 }
 0xd80   :  { %v2106_v52 = vpop.f32.mrb[22].mxu0 }
 0xd81   :  { %v1325_v53 = vadd.f32 %v2106_v52, %v1503_v24  ;;  %v1319_v54 = vpop.f32.mrb[23].mxu0 }
 0xd82   :  { %v1320_v33 = vadd.f32 %v1503_v24, %v1319_v54 }
 0xd83   :  { %v1335_v56 = vmax.f32 %v1325_v53, 0.0 }
 0xd84   :  { %v1334_v63 = vmax.f32 %v1320_v33, 0.0  ;;  %v2141_v55 = vpop.f32.mrb[24].mxu0 }
 0xd85   :  { %v1431_v57 = vadd.f32 %v2141_v55, %v1504_v34  ;;  %v1425_v60 = vpop.f32.mrb[25].mxu0 }
 0xd86   :  { %v1426_v2 = vadd.f32 %v1504_v34, %v1425_v60  ;;  %2148 = vmatprep.mubr.f32.mxu1 %v1334_v63 }
 0xd87   :  { %v1465_v58 = vadd.f32 %v1431_v57, %v1329_v44  ;;  %2149 = vmatmul.mubr.f32.gmra.mrb[20].mxu1 %v1335_v56 }
 0xd88   :  { %v1464_v3 = vadd.f32 %v1426_v2, %v1328_v39 }
 0xd89   :  { %1473 = vst [vmem:[%s3160_s11 + $0x8] sm:$0xff] %v1465_v58 }
 0xd8a   :  { %1472 = vst [vmem:[%s3160_s11] sm:$0xff] %v1464_v3 }
 0xe5a   :  { %v2150_v59 = vpop.f32.mrb[20].mxu1 }
 0xe5b   :  { %v1461_v6 = vadd.f32 %v2150_v59, %v1504_v34  ;;  %v1455_v8 = vpop.f32.mrb[21].mxu1 }
 0xe5c   :  { %v1456_v10 = vadd.f32 %v1504_v34, %v1455_v8 }
 0xe5d   :  { %v1471_v5 = vadd.f32 %v1461_v6, %v1335_v56 }
 0xe5e   :  { %v1470_v7 = vadd.f32 %v1456_v10, %v1334_v63 }
 0xe5f   :  { %1479 = vst [vmem:[%s3160_s11 + $0x38] sm:$0xff] %v1471_v5 }
 0xe60   :  { %1478 = vst [vmem:[%s3160_s11 + $0x30] sm:$0xff] %v1470_v7 }

</bundles_post_ra>
